<compile_context>
chip_gen: v5e
topology: v5e:2x2
jax: 0.10.0
libtpu: 0.0.40
codegen_flags: <defaults>
</compile_context>

<pallas_src>
import numpy as np
import jax
import jax.numpy as jnp
from jax import lax
from jax.experimental import pallas as pl
from jax.experimental.pallas import tpu as pltpu

MXU_INPUT_DTYPE = jnp.bfloat16   # conv-GEMM operand dtype (accumulation is f32)

_ACTIVATIONS = {
    "relu": lambda x: jnp.maximum(x, 0.0),
    "tanh": jnp.tanh,
    "sigmoid": jax.nn.sigmoid,
}


def conv2d_output_shape(h, w, kernel_size, stride, padding):
    h = (h + 2 * padding - (kernel_size - 1) - 1) // stride + 1
    w = (w + 2 * padding - (kernel_size - 1) - 1) // stride + 1
    return h, w


def _col_selector(w_in, ow, k, stride, pad):
    """0/1 matrix: (w_in, k*ow); sel[w, j*ow+s] = 1 iff w == stride*s + j - pad.

    Right-multiplying a (rows, w_in) slab by this matrix performs the strided
    column tap extraction AND the zero padding along W in one tiny matmul.
    """
    sel = np.zeros((w_in, k * ow), np.float32)
    for j in range(k):
        for s in range(ow):
            col = stride * s + j - pad
            if 0 <= col < w_in:
                sel[col, j * ow + s] = 1.0
    return jnp.asarray(sel)


# ---------------------------------------------------------------------------
# Parameter init (PyTorch layouts) + one-time weight layout prep for the kernel
# ---------------------------------------------------------------------------
def init_params(key, cfg):
    in_channels = [cfg["in_channels"]] + list(cfg["channels"][:-1])
    conv_params = []
    for ic, oc, k in zip(in_channels, cfg["channels"], cfg["kernel_sizes"]):
        key, kw_, kb_ = jax.random.split(key, 3)
        # PyTorch Conv2d weight layout: (out_c, in_c, kh, kw)
        conv_params.append((
            0.1 * jax.random.normal(kw_, (oc, ic, k, k), jnp.float32),
            0.1 * jax.random.normal(kb_, (oc,), jnp.float32),
        ))
    h, w = cfg["h"], cfg["w"]
    for k, s, p in zip(cfg["kernel_sizes"], cfg["strides"], cfg["paddings"]):
        h, w = conv2d_output_shape(h, w, k, s, p)
    conv_out = h * w * cfg["channels"][-1]
    key, kw_, kb_ = jax.random.split(key, 3)
    # PyTorch Linear weight layout: (out_features, in_features)
    head = (
        0.1 * jax.random.normal(
            kw_, (cfg["action_dim"], conv_out + cfg["num_aux"]), jnp.float32),
        0.1 * jax.random.normal(kb_, (cfg["action_dim"],), jnp.float32),
    )
    return {"conv": conv_params, "head": head}


def prepare_params(params, cfg, mxu_dtype=MXU_INPUT_DTYPE):
    """One-time weight-layout prep (no per-forward activation glue)."""
    layer_meta, flat = [], []
    h, w, cin = cfg["h"], cfg["w"], cfg["in_channels"]
    for li, ((wt, b), k, s, p) in enumerate(
            zip(params["conv"], cfg["kernel_sizes"], cfg["strides"],
                cfg["paddings"])):
        oc = wt.shape[0]
        oh, ow = conv2d_output_shape(h, w, k, s, p)
        if li == 0:
            # first layer's in-kernel im2col rows are ordered (j, c, i)
            wmat = jnp.transpose(wt, (0, 3, 1, 2)).reshape(oc, k * cin * k)
        else:
            # later layers' im2col rows are ordered (j, i, c)
            wmat = jnp.transpose(wt, (0, 3, 2, 1)).reshape(oc, k * k * cin)
        flat += [_col_selector(w, ow, k, s, p),
                 wmat.astype(mxu_dtype),
                 b.reshape(oc, 1).astype(jnp.float32)]
        layer_meta.append(dict(cin=cin, h=h, w=w, cout=oc, k=k, stride=s,
                               pad=p, oh=oh, ow=ow))
        cin, h, w = oc, oh, ow
    conv_out = cin * h * w
    wh, bh = params["head"]
    flat += [
        # head weight over conv features, reshaped to (A, C_last, OH*OW):
        wh[:, :conv_out].reshape(cfg["action_dim"], cin, h * w).astype(jnp.float32),
        wh[:, conv_out:].astype(jnp.float32),                 # (A, num_aux)
        bh.reshape(cfg["action_dim"], 1).astype(jnp.float32),
    ]
    return tuple(layer_meta), tuple(flat)


# ---------------------------------------------------------------------------
# Fused Pallas kernel: whole CNNBasic.forward for one batch element / grid step
# ---------------------------------------------------------------------------
def _make_kernel(layer_meta, act_name, mxu_dtype):
    n_layers = len(layer_meta)
    act = _ACTIVATIONS[act_name]

    def kernel(*refs):
        x_ref, aux_ref = refs[0], refs[1]
        lrefs = refs[2:2 + 3 * n_layers]
        whc_ref, wha_ref, bh_ref = refs[2 + 3 * n_layers:2 + 3 * n_layers + 3]
        out_ref = refs[-1]

        img = x_ref[...]                 # (1, C0, H0, W0) NCHW block
        y = None                         # previous activations, (C, OH*OW) f32

        for li, m in enumerate(layer_meta):
            sel_ref, w_ref, b_ref = lrefs[3 * li:3 * li + 3]
            cin, h_in, w_in = m["cin"], m["h"], m["w"]
            k, st, pad = m["k"], m["stride"], m["pad"]
            oh, ow = m["oh"], m["ow"]
            kc = k * ow
            sel = sel_ref[...]           # (w_in, k*ow): stride + W-pad folded in

            if li == 0:
                # Read the NCHW block directly; per-channel column selection
                # keeps everything 2-D.  xs_c[c][h, j*ow+s] = x_padW[c,h,2s+j].
                xs_c = [jnp.dot(img[0, c], sel,
                                preferred_element_type=jnp.float32)
                        for c in range(cin)]
            else:
                # Rows ordered (h, c) so each output-row window is ONE
                # contiguous 2-D slice of xs.
                x2d = jnp.concatenate(
                    [y[:, hh * w_in:(hh + 1) * w_in] for hh in range(h_in)],
                    axis=0)                                       # (h_in*cin, w_in)
                xs = jnp.dot(x2d, sel, preferred_element_type=jnp.float32)

            windows = []
            for r in range(oh):
                lo = st * r - pad
                hi = lo + k
                pieces = []
                if li == 0:
                    for c in range(cin):
                        if lo < 0:
                            pieces.append(jnp.zeros((-lo, kc), jnp.float32))
                        pieces.append(xs_c[c][max(lo, 0):min(hi, h_in), :])
                        if hi > h_in:
                            pieces.append(jnp.zeros((hi - h_in, kc), jnp.float32))
                else:
                    if lo < 0:
                        pieces.append(jnp.zeros((-lo * cin, kc), jnp.float32))
                    pieces.append(xs[max(lo, 0) * cin:min(hi, h_in) * cin, :])
                    if hi > h_in:
                        pieces.append(jnp.zeros(((hi - h_in) * cin, kc),
                                                jnp.float32))
                win = pieces[0] if len(pieces) == 1 else jnp.concatenate(
                    pieces, axis=0)
                windows.append(win)       # (cin*k, k*ow) tap window for row r

            # im2col matrix: rows (j, <window rows>), cols (r, s); lane axis is
            # the large spatial dim oh*ow (lane-dense GEMM output).
            per_j = [jnp.concatenate([wn[:, j * ow:(j + 1) * ow]
                                      for wn in windows], axis=1)
                     for j in range(k)]
            xcols = jnp.concatenate(per_j, axis=0)        # (k*cin*k, oh*ow)

            acc = jnp.dot(w_ref[...], xcols.astype(mxu_dtype),
                          preferred_element_type=jnp.float32)     # (cout, oh*ow)
            y = act(acc + b_ref[...])                     # f32 bias + activation

        # Linear head.  Rows of y are channels, cols are (r, s) -> y's row-major
        # flatten equals PyTorch's .view(N, -1) NCHW order.  259x6 is tiny, so a
        # VPU multiply + lane reductions beats a lane-sparse (K,6) matmul.
        conv_part = (whc_ref[...] * y[None, :, :]).sum(axis=2).sum(
            axis=1, keepdims=True)                                   # (A, 1)
        aux_part = (wha_ref[...] * aux_ref[...][0]).sum(
            axis=1, keepdims=True)                                   # (A, 1)
        out_ref[0] = conv_part + aux_part + bh_ref[...]              # (A, 1)

    return kernel


def make_cnn_forward(cfg, layer_meta, mxu_dtype=MXU_INPUT_DTYPE):
    act_dim = cfg["action_dim"]
    num_aux = cfg["num_aux"]
    assert num_aux >= 1, "num_aux=0 path not wired (see TODO)"
    kernel = _make_kernel(layer_meta, cfg.get("activation", "relu"), mxu_dtype)

    def _const_map(ndim):
        zeros = (0,) * ndim
        return lambda i: zeros

    @jax.jit
    def forward(img_nchw, aux_states, flat_params):
        n, c0, h0, w0 = img_nchw.shape
        in_specs = [
            pl.BlockSpec((1, c0, h0, w0), lambda i: (i, 0, 0, 0)),   # per-image
            pl.BlockSpec((1, 1, num_aux), lambda i: (i, 0, 0)),      # per-image
        ]
        # weights / selectors / biases: full blocks, constant index_map
        # -> DMA'd once, VMEM-resident across the batch grid.
        in_specs += [pl.BlockSpec(p.shape, _const_map(p.ndim))
                     for p in flat_params]
        grid_spec = pltpu.PrefetchScalarGridSpec(
            num_scalar_prefetch=0,
            grid=(n,),
            in_specs=in_specs,
            out_specs=pl.BlockSpec((1, act_dim, 1), lambda i: (i, 0, 0)),
        )
        out = pl.pallas_call(
            kernel,
            out_shape=jax.ShapeDtypeStruct((n, act_dim, 1), jnp.float32),
            grid_spec=grid_spec,
            compiler_params=pltpu.CompilerParams(
                dimension_semantics=("parallel",)),
        )(img_nchw.astype(jnp.float32),
          aux_states.astype(jnp.float32).reshape(n, 1, num_aux),
          *flat_params)
        return out.reshape(n, act_dim)

    return forward


# ---------------------------------------------------------------------------
# Pure-JAX reference (lax.conv) for correctness checking.
# ---------------------------------------------------------------------------
def reference_forward(img_nchw, aux_states, params, cfg, conv_dtype=jnp.float32):
    x = img_nchw.astype(jnp.float32)
    for (wt, b), s, p in zip(params["conv"], cfg["strides"], cfg["paddings"]):
        x = lax.conv_general_dilated(
            x.astype(conv_dtype), wt.astype(conv_dtype), (s, s),
            [(p, p), (p, p)], dimension_numbers=("NCHW", "OIHW", "NCHW"),
            preferred_element_type=jnp.float32)
        x = jnp.maximum(x + b[None, :, None, None], 0.0)
    feat = x.reshape(x.shape[0], -1)
    feat = jnp.concatenate([feat, aux_states.astype(jnp.float32)], axis=1)
    wh, bh = params["head"]
    return feat @ wh.T + bh


if __name__ == "__main__":
    # CNNBasic(state_dim=(16,16,4), action_dim=6, channels=[8,16],
    #          kernel_sizes=[3,3], strides=[2,2], paddings=[1,1],
    #          activation='relu', use_maxpool=False, num_aux=3)
    cfg = dict(h=16, w=16, in_channels=4, channels=[8, 16],
               kernel_sizes=[3, 3], strides=[2, 2], paddings=[1, 1],
               activation="relu", action_dim=6, num_aux=3)

    key = jax.random.PRNGKey(0)
    kp, kx, ka = jax.random.split(key, 3)
    params = init_params(kp, cfg)

    batch = 2
    img = jax.random.normal(kx, (batch, cfg["in_channels"], cfg["h"], cfg["w"]),
                            jnp.float32)                    # NCHW, like PyTorch
    aux = jax.random.normal(ka, (batch, cfg["num_aux"]), jnp.float32)

    layer_meta, flat_params = prepare_params(params, cfg)
    forward = make_cnn_forward(cfg, layer_meta)

    out = jax.block_until_ready(forward(img, aux, flat_params))
    assert out.shape == (batch, cfg["action_dim"]), out.shape

    # Tight check vs. a reference whose conv operands are rounded to the same
    # MXU dtype (isolates kernel/indexing bugs from intentional bf16 rounding).
    ref_matched = reference_forward(img, aux, params, cfg,
                                    conv_dtype=MXU_INPUT_DTYPE)
    assert jnp.allclose(out, ref_matched, atol=2e-3, rtol=2e-3), (out, ref_matched)
    # Looser check vs. the exact f32 module semantics (bf16 MXU inputs only
    # introduce ~0.5% error at these scales).
    ref_f32 = reference_forward(img, aux, params, cfg, conv_dtype=jnp.float32)
    assert jnp.allclose(out, ref_f32, atol=5e-2, rtol=5e-2), (out, ref_f32)

    print("KERNEL_OK")
</pallas_src>

<mosaic_0001>
module attributes {stable_mosaic.version = 11 : i64} {
  func.func @kernel(%arg0: i32, %arg1: memref<1x4x16x16xf32, #tpu.memory_space<vmem>>, %arg2: memref<1x1x3xf32, #tpu.memory_space<vmem>>, %arg3: memref<16x24xf32, #tpu.memory_space<vmem>>, %arg4: memref<8x36xbf16, #tpu.memory_space<vmem>>, %arg5: memref<8x1xf32, #tpu.memory_space<vmem>>, %arg6: memref<8x12xf32, #tpu.memory_space<vmem>>, %arg7: memref<16x72xbf16, #tpu.memory_space<vmem>>, %arg8: memref<16x1xf32, #tpu.memory_space<vmem>>, %arg9: memref<6x16x16xf32, #tpu.memory_space<vmem>>, %arg10: memref<6x3xf32, #tpu.memory_space<vmem>>, %arg11: memref<6x1xf32, #tpu.memory_space<vmem>>, %arg12: memref<1x6x1xf32, #tpu.memory_space<vmem>>) attributes {dimension_semantics = [#tpu.dimension_semantics<parallel>], iteration_bounds = array<i64: 2>, scalar_prefetch = 0 : i64, scratch_operands = 0 : i64, tpu.core_type = #tpu.core_type<tc>, window_params = [{transform_indices = @transform_0, window_bounds = array<i64: 1, 4, 16, 16>}, {transform_indices = @transform_1, window_bounds = array<i64: 1, 1, 3>}, {pipeline_mode = #tpu.pipeline_mode<synchronous>, transform_indices = @transform_2, window_bounds = array<i64: 16, 24>}, {pipeline_mode = #tpu.pipeline_mode<synchronous>, transform_indices = @transform_3, window_bounds = array<i64: 8, 36>}, {pipeline_mode = #tpu.pipeline_mode<synchronous>, transform_indices = @transform_4, window_bounds = array<i64: 8, 1>}, {pipeline_mode = #tpu.pipeline_mode<synchronous>, transform_indices = @transform_5, window_bounds = array<i64: 8, 12>}, {pipeline_mode = #tpu.pipeline_mode<synchronous>, transform_indices = @transform_6, window_bounds = array<i64: 16, 72>}, {pipeline_mode = #tpu.pipeline_mode<synchronous>, transform_indices = @transform_7, window_bounds = array<i64: 16, 1>}, {pipeline_mode = #tpu.pipeline_mode<synchronous>, transform_indices = @transform_8, window_bounds = array<i64: 6, 16, 16>}, {pipeline_mode = #tpu.pipeline_mode<synchronous>, transform_indices = @transform_9, window_bounds = array<i64: 6, 3>}, {pipeline_mode = #tpu.pipeline_mode<synchronous>, transform_indices = @transform_10, window_bounds = array<i64: 6, 1>}, {transform_indices = @transform_11, window_bounds = array<i64: 1, 6, 1>}]} {
    %c0 = arith.constant 0 : index
    %c0_0 = arith.constant 0 : index
    %c0_1 = arith.constant 0 : index
    %c0_2 = arith.constant 0 : index
    %0 = vector.load %arg1[%c0, %c0_0, %c0_1, %c0_2] : memref<1x4x16x16xf32, #tpu.memory_space<vmem>>, vector<1x4x16x16xf32>
    %c0_3 = arith.constant 0 : index
    %c0_4 = arith.constant 0 : index
    %1 = vector.load %arg3[%c0_3, %c0_4] : memref<16x24xf32, #tpu.memory_space<vmem>>, vector<16x24xf32>
    %2 = vector.extract_strided_slice %0 {offsets = [0, 0, 0, 0], sizes = [1, 1, 16, 16], strides = [1, 1, 1, 1]} : vector<1x4x16x16xf32> to vector<1x1x16x16xf32>
    %3 = vector.shape_cast %2 : vector<1x1x16x16xf32> to vector<16x16xf32>
    %cst = arith.constant dense<0.000000e+00> : vector<16x24xf32>
    %4 = tpu.matmul %3, %1, %cst {dimension_numbers = #tpu.dot_dimension_numbers<[1], [0], [0], [1], [0, 0, 1, 1], [], []>} : vector<16x16xf32>, vector<16x24xf32>, vector<16x24xf32> -> vector<16x24xf32>
    %5 = vector.extract_strided_slice %0 {offsets = [0, 1, 0, 0], sizes = [1, 1, 16, 16], strides = [1, 1, 1, 1]} : vector<1x4x16x16xf32> to vector<1x1x16x16xf32>
    %6 = vector.shape_cast %5 : vector<1x1x16x16xf32> to vector<16x16xf32>
    %cst_5 = arith.constant dense<0.000000e+00> : vector<16x24xf32>
    %7 = tpu.matmul %6, %1, %cst_5 {dimension_numbers = #tpu.dot_dimension_numbers<[1], [0], [0], [1], [0, 0, 1, 1], [], []>} : vector<16x16xf32>, vector<16x24xf32>, vector<16x24xf32> -> vector<16x24xf32>
    %8 = vector.extract_strided_slice %0 {offsets = [0, 2, 0, 0], sizes = [1, 1, 16, 16], strides = [1, 1, 1, 1]} : vector<1x4x16x16xf32> to vector<1x1x16x16xf32>
    %9 = vector.shape_cast %8 : vector<1x1x16x16xf32> to vector<16x16xf32>
    %cst_6 = arith.constant dense<0.000000e+00> : vector<16x24xf32>
    %10 = tpu.matmul %9, %1, %cst_6 {dimension_numbers = #tpu.dot_dimension_numbers<[1], [0], [0], [1], [0, 0, 1, 1], [], []>} : vector<16x16xf32>, vector<16x24xf32>, vector<16x24xf32> -> vector<16x24xf32>
    %11 = vector.extract_strided_slice %0 {offsets = [0, 3, 0, 0], sizes = [1, 1, 16, 16], strides = [1, 1, 1, 1]} : vector<1x4x16x16xf32> to vector<1x1x16x16xf32>
    %12 = vector.shape_cast %11 : vector<1x1x16x16xf32> to vector<16x16xf32>
    %cst_7 = arith.constant dense<0.000000e+00> : vector<16x24xf32>
    %13 = tpu.matmul %12, %1, %cst_7 {dimension_numbers = #tpu.dot_dimension_numbers<[1], [0], [0], [1], [0, 0, 1, 1], [], []>} : vector<16x16xf32>, vector<16x24xf32>, vector<16x24xf32> -> vector<16x24xf32>
    %cst_8 = arith.constant 0.000000e+00 : f32
    %14 = vector.broadcast %cst_8 : f32 to vector<1x24xf32>
    %15 = vector.extract_strided_slice %4 {offsets = [0, 0], sizes = [2, 24], strides = [1, 1]} : vector<16x24xf32> to vector<2x24xf32>
    %cst_9 = arith.constant 0.000000e+00 : f32
    %16 = vector.broadcast %cst_9 : f32 to vector<1x24xf32>
    %17 = vector.extract_strided_slice %7 {offsets = [0, 0], sizes = [2, 24], strides = [1, 1]} : vector<16x24xf32> to vector<2x24xf32>
    %cst_10 = arith.constant 0.000000e+00 : f32
    %18 = vector.broadcast %cst_10 : f32 to vector<1x24xf32>
    %19 = vector.extract_strided_slice %10 {offsets = [0, 0], sizes = [2, 24], strides = [1, 1]} : vector<16x24xf32> to vector<2x24xf32>
    %cst_11 = arith.constant 0.000000e+00 : f32
    %20 = vector.broadcast %cst_11 : f32 to vector<1x24xf32>
    %21 = vector.extract_strided_slice %13 {offsets = [0, 0], sizes = [2, 24], strides = [1, 1]} : vector<16x24xf32> to vector<2x24xf32>
    %22 = tpu.concatenate %14, %15, %16, %17, %18, %19, %20, %21 in 0 : vector<1x24xf32>, vector<2x24xf32>, vector<1x24xf32>, vector<2x24xf32>, vector<1x24xf32>, vector<2x24xf32>, vector<1x24xf32>, vector<2x24xf32> -> vector<12x24xf32>
    %23 = vector.extract_strided_slice %4 {offsets = [1, 0], sizes = [3, 24], strides = [1, 1]} : vector<16x24xf32> to vector<3x24xf32>
    %24 = vector.extract_strided_slice %7 {offsets = [1, 0], sizes = [3, 24], strides = [1, 1]} : vector<16x24xf32> to vector<3x24xf32>
    %25 = vector.extract_strided_slice %10 {offsets = [1, 0], sizes = [3, 24], strides = [1, 1]} : vector<16x24xf32> to vector<3x24xf32>
    %26 = vector.extract_strided_slice %13 {offsets = [1, 0], sizes = [3, 24], strides = [1, 1]} : vector<16x24xf32> to vector<3x24xf32>
    %27 = tpu.concatenate %23, %24, %25, %26 in 0 : vector<3x24xf32>, vector<3x24xf32>, vector<3x24xf32>, vector<3x24xf32> -> vector<12x24xf32>
    %28 = vector.extract_strided_slice %4 {offsets = [3, 0], sizes = [3, 24], strides = [1, 1]} : vector<16x24xf32> to vector<3x24xf32>
    %29 = vector.extract_strided_slice %7 {offsets = [3, 0], sizes = [3, 24], strides = [1, 1]} : vector<16x24xf32> to vector<3x24xf32>
    %30 = vector.extract_strided_slice %10 {offsets = [3, 0], sizes = [3, 24], strides = [1, 1]} : vector<16x24xf32> to vector<3x24xf32>
    %31 = vector.extract_strided_slice %13 {offsets = [3, 0], sizes = [3, 24], strides = [1, 1]} : vector<16x24xf32> to vector<3x24xf32>
    %32 = tpu.concatenate %28, %29, %30, %31 in 0 : vector<3x24xf32>, vector<3x24xf32>, vector<3x24xf32>, vector<3x24xf32> -> vector<12x24xf32>
    %33 = vector.extract_strided_slice %4 {offsets = [5, 0], sizes = [3, 24], strides = [1, 1]} : vector<16x24xf32> to vector<3x24xf32>
    %34 = vector.extract_strided_slice %7 {offsets = [5, 0], sizes = [3, 24], strides = [1, 1]} : vector<16x24xf32> to vector<3x24xf32>
    %35 = vector.extract_strided_slice %10 {offsets = [5, 0], sizes = [3, 24], strides = [1, 1]} : vector<16x24xf32> to vector<3x24xf32>
    %36 = vector.extract_strided_slice %13 {offsets = [5, 0], sizes = [3, 24], strides = [1, 1]} : vector<16x24xf32> to vector<3x24xf32>
    %37 = tpu.concatenate %33, %34, %35, %36 in 0 : vector<3x24xf32>, vector<3x24xf32>, vector<3x24xf32>, vector<3x24xf32> -> vector<12x24xf32>
    %38 = vector.extract_strided_slice %4 {offsets = [7, 0], sizes = [3, 24], strides = [1, 1]} : vector<16x24xf32> to vector<3x24xf32>
    %39 = vector.extract_strided_slice %7 {offsets = [7, 0], sizes = [3, 24], strides = [1, 1]} : vector<16x24xf32> to vector<3x24xf32>
    %40 = vector.extract_strided_slice %10 {offsets = [7, 0], sizes = [3, 24], strides = [1, 1]} : vector<16x24xf32> to vector<3x24xf32>
    %41 = vector.extract_strided_slice %13 {offsets = [7, 0], sizes = [3, 24], strides = [1, 1]} : vector<16x24xf32> to vector<3x24xf32>
    %42 = tpu.concatenate %38, %39, %40, %41 in 0 : vector<3x24xf32>, vector<3x24xf32>, vector<3x24xf32>, vector<3x24xf32> -> vector<12x24xf32>
    %43 = vector.extract_strided_slice %4 {offsets = [9, 0], sizes = [3, 24], strides = [1, 1]} : vector<16x24xf32> to vector<3x24xf32>
    %44 = vector.extract_strided_slice %7 {offsets = [9, 0], sizes = [3, 24], strides = [1, 1]} : vector<16x24xf32> to vector<3x24xf32>
    %45 = vector.extract_strided_slice %10 {offsets = [9, 0], sizes = [3, 24], strides = [1, 1]} : vector<16x24xf32> to vector<3x24xf32>
    %46 = vector.extract_strided_slice %13 {offsets = [9, 0], sizes = [3, 24], strides = [1, 1]} : vector<16x24xf32> to vector<3x24xf32>
    %47 = tpu.concatenate %43, %44, %45, %46 in 0 : vector<3x24xf32>, vector<3x24xf32>, vector<3x24xf32>, vector<3x24xf32> -> vector<12x24xf32>
    %48 = vector.extract_strided_slice %4 {offsets = [11, 0], sizes = [3, 24], strides = [1, 1]} : vector<16x24xf32> to vector<3x24xf32>
    %49 = vector.extract_strided_slice %7 {offsets = [11, 0], sizes = [3, 24], strides = [1, 1]} : vector<16x24xf32> to vector<3x24xf32>
    %50 = vector.extract_strided_slice %10 {offsets = [11, 0], sizes = [3, 24], strides = [1, 1]} : vector<16x24xf32> to vector<3x24xf32>
    %51 = vector.extract_strided_slice %13 {offsets = [11, 0], sizes = [3, 24], strides = [1, 1]} : vector<16x24xf32> to vector<3x24xf32>
    %52 = tpu.concatenate %48, %49, %50, %51 in 0 : vector<3x24xf32>, vector<3x24xf32>, vector<3x24xf32>, vector<3x24xf32> -> vector<12x24xf32>
    %53 = vector.extract_strided_slice %4 {offsets = [13, 0], sizes = [3, 24], strides = [1, 1]} : vector<16x24xf32> to vector<3x24xf32>
    %54 = vector.extract_strided_slice %7 {offsets = [13, 0], sizes = [3, 24], strides = [1, 1]} : vector<16x24xf32> to vector<3x24xf32>
    %55 = vector.extract_strided_slice %10 {offsets = [13, 0], sizes = [3, 24], strides = [1, 1]} : vector<16x24xf32> to vector<3x24xf32>
    %56 = vector.extract_strided_slice %13 {offsets = [13, 0], sizes = [3, 24], strides = [1, 1]} : vector<16x24xf32> to vector<3x24xf32>
    %57 = tpu.concatenate %53, %54, %55, %56 in 0 : vector<3x24xf32>, vector<3x24xf32>, vector<3x24xf32>, vector<3x24xf32> -> vector<12x24xf32>
    %58 = vector.extract_strided_slice %22 {offsets = [0, 0], sizes = [12, 8], strides = [1, 1]} : vector<12x24xf32> to vector<12x8xf32>
    %59 = vector.extract_strided_slice %27 {offsets = [0, 0], sizes = [12, 8], strides = [1, 1]} : vector<12x24xf32> to vector<12x8xf32>
    %60 = vector.extract_strided_slice %32 {offsets = [0, 0], sizes = [12, 8], strides = [1, 1]} : vector<12x24xf32> to vector<12x8xf32>
    %61 = vector.extract_strided_slice %37 {offsets = [0, 0], sizes = [12, 8], strides = [1, 1]} : vector<12x24xf32> to vector<12x8xf32>
    %62 = vector.extract_strided_slice %42 {offsets = [0, 0], sizes = [12, 8], strides = [1, 1]} : vector<12x24xf32> to vector<12x8xf32>
    %63 = vector.extract_strided_slice %47 {offsets = [0, 0], sizes = [12, 8], strides = [1, 1]} : vector<12x24xf32> to vector<12x8xf32>
    %64 = vector.extract_strided_slice %52 {offsets = [0, 0], sizes = [12, 8], strides = [1, 1]} : vector<12x24xf32> to vector<12x8xf32>
    %65 = vector.extract_strided_slice %57 {offsets = [0, 0], sizes = [12, 8], strides = [1, 1]} : vector<12x24xf32> to vector<12x8xf32>
    %66 = tpu.concatenate %58, %59, %60, %61, %62, %63, %64, %65 in 1 : vector<12x8xf32>, vector<12x8xf32>, vector<12x8xf32>, vector<12x8xf32>, vector<12x8xf32>, vector<12x8xf32>, vector<12x8xf32>, vector<12x8xf32> -> vector<12x64xf32>
    %67 = vector.extract_strided_slice %22 {offsets = [0, 8], sizes = [12, 8], strides = [1, 1]} : vector<12x24xf32> to vector<12x8xf32>
    %68 = vector.extract_strided_slice %27 {offsets = [0, 8], sizes = [12, 8], strides = [1, 1]} : vector<12x24xf32> to vector<12x8xf32>
    %69 = vector.extract_strided_slice %32 {offsets = [0, 8], sizes = [12, 8], strides = [1, 1]} : vector<12x24xf32> to vector<12x8xf32>
    %70 = vector.extract_strided_slice %37 {offsets = [0, 8], sizes = [12, 8], strides = [1, 1]} : vector<12x24xf32> to vector<12x8xf32>
    %71 = vector.extract_strided_slice %42 {offsets = [0, 8], sizes = [12, 8], strides = [1, 1]} : vector<12x24xf32> to vector<12x8xf32>
    %72 = vector.extract_strided_slice %47 {offsets = [0, 8], sizes = [12, 8], strides = [1, 1]} : vector<12x24xf32> to vector<12x8xf32>
    %73 = vector.extract_strided_slice %52 {offsets = [0, 8], sizes = [12, 8], strides = [1, 1]} : vector<12x24xf32> to vector<12x8xf32>
    %74 = vector.extract_strided_slice %57 {offsets = [0, 8], sizes = [12, 8], strides = [1, 1]} : vector<12x24xf32> to vector<12x8xf32>
    %75 = tpu.concatenate %67, %68, %69, %70, %71, %72, %73, %74 in 1 : vector<12x8xf32>, vector<12x8xf32>, vector<12x8xf32>, vector<12x8xf32>, vector<12x8xf32>, vector<12x8xf32>, vector<12x8xf32>, vector<12x8xf32> -> vector<12x64xf32>
    %76 = vector.extract_strided_slice %22 {offsets = [0, 16], sizes = [12, 8], strides = [1, 1]} : vector<12x24xf32> to vector<12x8xf32>
    %77 = vector.extract_strided_slice %27 {offsets = [0, 16], sizes = [12, 8], strides = [1, 1]} : vector<12x24xf32> to vector<12x8xf32>
    %78 = vector.extract_strided_slice %32 {offsets = [0, 16], sizes = [12, 8], strides = [1, 1]} : vector<12x24xf32> to vector<12x8xf32>
    %79 = vector.extract_strided_slice %37 {offsets = [0, 16], sizes = [12, 8], strides = [1, 1]} : vector<12x24xf32> to vector<12x8xf32>
    %80 = vector.extract_strided_slice %42 {offsets = [0, 16], sizes = [12, 8], strides = [1, 1]} : vector<12x24xf32> to vector<12x8xf32>
    %81 = vector.extract_strided_slice %47 {offsets = [0, 16], sizes = [12, 8], strides = [1, 1]} : vector<12x24xf32> to vector<12x8xf32>
    %82 = vector.extract_strided_slice %52 {offsets = [0, 16], sizes = [12, 8], strides = [1, 1]} : vector<12x24xf32> to vector<12x8xf32>
    %83 = vector.extract_strided_slice %57 {offsets = [0, 16], sizes = [12, 8], strides = [1, 1]} : vector<12x24xf32> to vector<12x8xf32>
    %84 = tpu.concatenate %76, %77, %78, %79, %80, %81, %82, %83 in 1 : vector<12x8xf32>, vector<12x8xf32>, vector<12x8xf32>, vector<12x8xf32>, vector<12x8xf32>, vector<12x8xf32>, vector<12x8xf32>, vector<12x8xf32> -> vector<12x64xf32>
    %85 = tpu.concatenate %66, %75, %84 in 0 : vector<12x64xf32>, vector<12x64xf32>, vector<12x64xf32> -> vector<36x64xf32>
    %c0_12 = arith.constant 0 : index
    %c0_13 = arith.constant 0 : index
    %86 = vector.load %arg4[%c0_12, %c0_13] : memref<8x36xbf16, #tpu.memory_space<vmem>>, vector<8x36xbf16>
    %87 = arith.truncf %85 : vector<36x64xf32> to vector<36x64xbf16>
    %cst_14 = arith.constant dense<0.000000e+00> : vector<8x64xf32>
    %88 = tpu.matmul %86, %87, %cst_14 {dimension_numbers = #tpu.dot_dimension_numbers<[1], [0], [0], [1], [0, 0, 1, 1], [], []>} : vector<8x36xbf16>, vector<36x64xbf16>, vector<8x64xf32> -> vector<8x64xf32>
    %c0_15 = arith.constant 0 : index
    %c0_16 = arith.constant 0 : index
    %89 = vector.load %arg5[%c0_15, %c0_16] : memref<8x1xf32, #tpu.memory_space<vmem>>, vector<8x1xf32>
    %90 = vector.broadcast %89 : vector<8x1xf32> to vector<8x64xf32>
    %91 = arith.addf %88, %90 : vector<8x64xf32>
    %cst_17 = arith.constant 0.000000e+00 : f32
    %92 = vector.broadcast %cst_17 : f32 to vector<8x64xf32>
    %93 = arith.maximumf %91, %92 : vector<8x64xf32>
    %c0_18 = arith.constant 0 : index
    %c0_19 = arith.constant 0 : index
    %94 = vector.load %arg6[%c0_18, %c0_19] : memref<8x12xf32, #tpu.memory_space<vmem>>, vector<8x12xf32>
    %95 = vector.extract_strided_slice %93 {offsets = [0, 0], sizes = [8, 8], strides = [1, 1]} : vector<8x64xf32> to vector<8x8xf32>
    %96 = vector.extract_strided_slice %93 {offsets = [0, 8], sizes = [8, 8], strides = [1, 1]} : vector<8x64xf32> to vector<8x8xf32>
    %97 = vector.extract_strided_slice %93 {offsets = [0, 16], sizes = [8, 8], strides = [1, 1]} : vector<8x64xf32> to vector<8x8xf32>
    %98 = vector.extract_strided_slice %93 {offsets = [0, 24], sizes = [8, 8], strides = [1, 1]} : vector<8x64xf32> to vector<8x8xf32>
    %99 = vector.extract_strided_slice %93 {offsets = [0, 32], sizes = [8, 8], strides = [1, 1]} : vector<8x64xf32> to vector<8x8xf32>
    %100 = vector.extract_strided_slice %93 {offsets = [0, 40], sizes = [8, 8], strides = [1, 1]} : vector<8x64xf32> to vector<8x8xf32>
    %101 = vector.extract_strided_slice %93 {offsets = [0, 48], sizes = [8, 8], strides = [1, 1]} : vector<8x64xf32> to vector<8x8xf32>
    %102 = vector.extract_strided_slice %93 {offsets = [0, 56], sizes = [8, 8], strides = [1, 1]} : vector<8x64xf32> to vector<8x8xf32>
    %103 = tpu.concatenate %95, %96, %97, %98, %99, %100, %101, %102 in 0 : vector<8x8xf32>, vector<8x8xf32>, vector<8x8xf32>, vector<8x8xf32>, vector<8x8xf32>, vector<8x8xf32>, vector<8x8xf32>, vector<8x8xf32> -> vector<64x8xf32>
    %cst_20 = arith.constant dense<0.000000e+00> : vector<64x12xf32>
    %104 = tpu.matmul %103, %94, %cst_20 {dimension_numbers = #tpu.dot_dimension_numbers<[1], [0], [0], [1], [0, 0, 1, 1], [], []>} : vector<64x8xf32>, vector<8x12xf32>, vector<64x12xf32> -> vector<64x12xf32>
    %cst_21 = arith.constant 0.000000e+00 : f32
    %105 = vector.broadcast %cst_21 : f32 to vector<8x12xf32>
    %106 = vector.extract_strided_slice %104 {offsets = [0, 0], sizes = [16, 12], strides = [1, 1]} : vector<64x12xf32> to vector<16x12xf32>
    %107 = tpu.concatenate %105, %106 in 0 : vector<8x12xf32>, vector<16x12xf32> -> vector<24x12xf32>
    %108 = vector.extract_strided_slice %104 {offsets = [8, 0], sizes = [24, 12], strides = [1, 1]} : vector<64x12xf32> to vector<24x12xf32>
    %109 = vector.extract_strided_slice %104 {offsets = [24, 0], sizes = [24, 12], strides = [1, 1]} : vector<64x12xf32> to vector<24x12xf32>
    %110 = vector.extract_strided_slice %104 {offsets = [40, 0], sizes = [24, 12], strides = [1, 1]} : vector<64x12xf32> to vector<24x12xf32>
    %111 = vector.extract_strided_slice %107 {offsets = [0, 0], sizes = [24, 4], strides = [1, 1]} : vector<24x12xf32> to vector<24x4xf32>
    %112 = vector.extract_strided_slice %108 {offsets = [0, 0], sizes = [24, 4], strides = [1, 1]} : vector<24x12xf32> to vector<24x4xf32>
    %113 = vector.extract_strided_slice %109 {offsets = [0, 0], sizes = [24, 4], strides = [1, 1]} : vector<24x12xf32> to vector<24x4xf32>
    %114 = vector.extract_strided_slice %110 {offsets = [0, 0], sizes = [24, 4], strides = [1, 1]} : vector<24x12xf32> to vector<24x4xf32>
    %115 = tpu.concatenate %111, %112, %113, %114 in 1 : vector<24x4xf32>, vector<24x4xf32>, vector<24x4xf32>, vector<24x4xf32> -> vector<24x16xf32>
    %116 = vector.extract_strided_slice %107 {offsets = [0, 4], sizes = [24, 4], strides = [1, 1]} : vector<24x12xf32> to vector<24x4xf32>
    %117 = vector.extract_strided_slice %108 {offsets = [0, 4], sizes = [24, 4], strides = [1, 1]} : vector<24x12xf32> to vector<24x4xf32>
    %118 = vector.extract_strided_slice %109 {offsets = [0, 4], sizes = [24, 4], strides = [1, 1]} : vector<24x12xf32> to vector<24x4xf32>
    %119 = vector.extract_strided_slice %110 {offsets = [0, 4], sizes = [24, 4], strides = [1, 1]} : vector<24x12xf32> to vector<24x4xf32>
    %120 = tpu.concatenate %116, %117, %118, %119 in 1 : vector<24x4xf32>, vector<24x4xf32>, vector<24x4xf32>, vector<24x4xf32> -> vector<24x16xf32>
    %121 = vector.extract_strided_slice %107 {offsets = [0, 8], sizes = [24, 4], strides = [1, 1]} : vector<24x12xf32> to vector<24x4xf32>
    %122 = vector.extract_strided_slice %108 {offsets = [0, 8], sizes = [24, 4], strides = [1, 1]} : vector<24x12xf32> to vector<24x4xf32>
    %123 = vector.extract_strided_slice %109 {offsets = [0, 8], sizes = [24, 4], strides = [1, 1]} : vector<24x12xf32> to vector<24x4xf32>
    %124 = vector.extract_strided_slice %110 {offsets = [0, 8], sizes = [24, 4], strides = [1, 1]} : vector<24x12xf32> to vector<24x4xf32>
    %125 = tpu.concatenate %121, %122, %123, %124 in 1 : vector<24x4xf32>, vector<24x4xf32>, vector<24x4xf32>, vector<24x4xf32> -> vector<24x16xf32>
    %126 = tpu.concatenate %115, %120, %125 in 0 : vector<24x16xf32>, vector<24x16xf32>, vector<24x16xf32> -> vector<72x16xf32>
    %c0_22 = arith.constant 0 : index
    %c0_23 = arith.constant 0 : index
    %127 = vector.load %arg7[%c0_22, %c0_23] : memref<16x72xbf16, #tpu.memory_space<vmem>>, vector<16x72xbf16>
    %128 = arith.truncf %126 : vector<72x16xf32> to vector<72x16xbf16>
    %cst_24 = arith.constant dense<0.000000e+00> : vector<16x16xf32>
    %129 = tpu.matmul %127, %128, %cst_24 {dimension_numbers = #tpu.dot_dimension_numbers<[1], [0], [0], [1], [0, 0, 1, 1], [], []>} : vector<16x72xbf16>, vector<72x16xbf16>, vector<16x16xf32> -> vector<16x16xf32>
    %c0_25 = arith.constant 0 : index
    %c0_26 = arith.constant 0 : index
    %130 = vector.load %arg8[%c0_25, %c0_26] : memref<16x1xf32, #tpu.memory_space<vmem>>, vector<16x1xf32>
    %131 = vector.broadcast %130 : vector<16x1xf32> to vector<16x16xf32>
    %132 = arith.addf %129, %131 : vector<16x16xf32>
    %cst_27 = arith.constant 0.000000e+00 : f32
    %133 = vector.broadcast %cst_27 : f32 to vector<16x16xf32>
    %134 = arith.maximumf %132, %133 : vector<16x16xf32>
    %c0_28 = arith.constant 0 : index
    %c0_29 = arith.constant 0 : index
    %c0_30 = arith.constant 0 : index
    %135 = vector.load %arg9[%c0_28, %c0_29, %c0_30] : memref<6x16x16xf32, #tpu.memory_space<vmem>>, vector<6x16x16xf32>
    %136 = vector.shape_cast %134 : vector<16x16xf32> to vector<1x16x16xf32>
    %137 = vector.broadcast %136 : vector<1x16x16xf32> to vector<6x16x16xf32>
    %138 = arith.mulf %135, %137 : vector<6x16x16xf32>
    %cst_31 = arith.constant dense<0.000000e+00> : vector<6x16xf32>
    %139 = vector.multi_reduction <add>, %138, %cst_31 [2] : vector<6x16x16xf32> to vector<6x16xf32>
    %cst_32 = arith.constant dense<0.000000e+00> : vector<6xf32>
    %140 = vector.multi_reduction <add>, %139, %cst_32 [1] : vector<6x16xf32> to vector<6xf32>
    %141 = vector.shape_cast %140 : vector<6xf32> to vector<6x1xf32>
    %c0_33 = arith.constant 0 : index
    %c0_34 = arith.constant 0 : index
    %142 = vector.load %arg10[%c0_33, %c0_34] : memref<6x3xf32, #tpu.memory_space<vmem>>, vector<6x3xf32>
    %c0_35 = arith.constant 0 : index
    %c0_36 = arith.constant 0 : index
    %c0_37 = arith.constant 0 : index
    %143 = vector.load %arg2[%c0_35, %c0_36, %c0_37] : memref<1x1x3xf32, #tpu.memory_space<vmem>>, vector<1x1x3xf32>
    %144 = vector.shape_cast %143 : vector<1x1x3xf32> to vector<1x3xf32>
    %145 = vector.broadcast %144 : vector<1x3xf32> to vector<6x3xf32>
    %146 = arith.mulf %142, %145 : vector<6x3xf32>
    %cst_38 = arith.constant dense<0.000000e+00> : vector<6xf32>
    %147 = vector.multi_reduction <add>, %146, %cst_38 [1] : vector<6x3xf32> to vector<6xf32>
    %148 = vector.shape_cast %147 : vector<6xf32> to vector<6x1xf32>
    %149 = arith.addf %141, %148 : vector<6x1xf32>
    %c0_39 = arith.constant 0 : index
    %c0_40 = arith.constant 0 : index
    %150 = vector.load %arg11[%c0_39, %c0_40] : memref<6x1xf32, #tpu.memory_space<vmem>>, vector<6x1xf32>
    %151 = arith.addf %149, %150 : vector<6x1xf32>
    %c0_41 = arith.constant 0 : index
    %c0_42 = arith.constant 0 : index
    %c0_43 = arith.constant 0 : index
    %152 = vector.load %arg12[%c0_41, %c0_42, %c0_43] : memref<1x6x1xf32, #tpu.memory_space<vmem>>, vector<1x6x1xf32>
    %153 = vector.shape_cast %152 : vector<1x6x1xf32> to vector<6x1xf32>
    %154 = vector.shape_cast %151 : vector<6x1xf32> to vector<1x6x1xf32>
    tpu.vector_store %arg12[%c0_41, %c0_42, %c0_43], %154 {strides = array<i32>} : memref<1x6x1xf32, #tpu.memory_space<vmem>>, vector<1x6x1xf32>,
    return
  }
  func.func @transform_0(%arg0: i32) -> (i32, i32, i32, i32) {
    %c0_i32 = arith.constant 0 : i32
    %c0_i32_0 = arith.constant 0 : i32
    %c0_i32_1 = arith.constant 0 : i32
    %c0_i32_2 = arith.constant 0 : i32
    return %arg0, %c0_i32, %c0_i32_0, %c0_i32_1 : i32, i32, i32, i32
  }
  func.func @transform_1(%arg0: i32) -> (i32, i32, i32) {
    %c0_i32 = arith.constant 0 : i32
    %c0_i32_0 = arith.constant 0 : i32
    %c0_i32_1 = arith.constant 0 : i32
    return %arg0, %c0_i32, %c0_i32_0 : i32, i32, i32
  }
  func.func @transform_2(%arg0: i32) -> (i32, i32) {
    %c0_i32 = arith.constant 0 : i32
    %c0_i32_0 = arith.constant 0 : i32
    %c0_i32_1 = arith.constant 0 : i32
    return %c0_i32, %c0_i32_0 : i32, i32
  }
  func.func @transform_3(%arg0: i32) -> (i32, i32) {
    %c0_i32 = arith.constant 0 : i32
    %c0_i32_0 = arith.constant 0 : i32
    %c0_i32_1 = arith.constant 0 : i32
    return %c0_i32, %c0_i32_0 : i32, i32
  }
  func.func @transform_4(%arg0: i32) -> (i32, i32) {
    %c0_i32 = arith.constant 0 : i32
    %c0_i32_0 = arith.constant 0 : i32
    %c0_i32_1 = arith.constant 0 : i32
    return %c0_i32, %c0_i32_0 : i32, i32
  }
  func.func @transform_5(%arg0: i32) -> (i32, i32) {
    %c0_i32 = arith.constant 0 : i32
    %c0_i32_0 = arith.constant 0 : i32
    %c0_i32_1 = arith.constant 0 : i32
    return %c0_i32, %c0_i32_0 : i32, i32
  }
  func.func @transform_6(%arg0: i32) -> (i32, i32) {
    %c0_i32 = arith.constant 0 : i32
    %c0_i32_0 = arith.constant 0 : i32
    %c0_i32_1 = arith.constant 0 : i32
    return %c0_i32, %c0_i32_0 : i32, i32
  }
  func.func @transform_7(%arg0: i32) -> (i32, i32) {
    %c0_i32 = arith.constant 0 : i32
    %c0_i32_0 = arith.constant 0 : i32
    %c0_i32_1 = arith.constant 0 : i32
    return %c0_i32, %c0_i32_0 : i32, i32
  }
  func.func @transform_8(%arg0: i32) -> (i32, i32, i32) {
    %c0_i32 = arith.constant 0 : i32
    %c0_i32_0 = arith.constant 0 : i32
    %c0_i32_1 = arith.constant 0 : i32
    %c0_i32_2 = arith.constant 0 : i32
    return %c0_i32, %c0_i32_0, %c0_i32_1 : i32, i32, i32
  }
  func.func @transform_9(%arg0: i32) -> (i32, i32) {
    %c0_i32 = arith.constant 0 : i32
    %c0_i32_0 = arith.constant 0 : i32
    %c0_i32_1 = arith.constant 0 : i32
    return %c0_i32, %c0_i32_0 : i32, i32
  }
  func.func @transform_10(%arg0: i32) -> (i32, i32) {
    %c0_i32 = arith.constant 0 : i32
    %c0_i32_0 = arith.constant 0 : i32
    %c0_i32_1 = arith.constant 0 : i32
    return %c0_i32, %c0_i32_0 : i32, i32
  }
  func.func @transform_11(%arg0: i32) -> (i32, i32, i32) {
    %c0_i32 = arith.constant 0 : i32
    %c0_i32_0 = arith.constant 0 : i32
    %c0_i32_1 = arith.constant 0 : i32
    return %arg0, %c0_i32, %c0_i32_0 : i32, i32, i32
  }
}

</mosaic_0001>

<bundles_post_ra>
// kernel: forward.1
= control target key start
LH: loop header
LB: loop body
LE: loop exit
PB: predicated region body
PF: predicated region fallthrough
CT: control target
= control target key end

     0   :  { %s2275_s0 = inlined_call_operand.hbm [shape: f32[2,4,16,16], index: 0, kind: input, shape index: {}]   ;;  %s2276_s1 = inlined_call_operand.vmem [shape: f32[2,1,3], index: 1, kind: input, shape index: {}]   ;;  %s2277_s2 = inlined_call_operand.vmem [shape: f32[16,24], index: 2, kind: input, shape index: {}]   ;;  %s2278_s3 = inlined_call_operand.vmem [shape: bf16[8,36], index: 3, kind: input, shape index: {}]   ;;  %s2279_s4 = inlined_call_operand.vmem [shape: f32[8,1], index: 4, kind: input, shape index: {}]   ;;  %s2280_s5 = inlined_call_operand.vmem [shape: f32[8,12], index: 5, kind: input, shape index: {}]   ;;  %s2281_s6 = inlined_call_operand.vmem [shape: bf16[16,72], index: 6, kind: input, shape index: {}]   ;;  %s2282_s7 = inlined_call_operand.vmem [shape: f32[16,1], index: 7, kind: input, shape index: {}]   ;;  %s2283_s8 = inlined_call_operand.hbm [shape: f32[6,16,16], index: 8, kind: input, shape index: {}]   ;;  %s2284_s9 = inlined_call_operand.vmem [shape: f32[6,3], index: 9, kind: input, shape index: {}]   ;;  %s2285_s10 = inlined_call_operand.vmem [shape: f32[6,1], index: 10, kind: input, shape index: {}]   ;;  %s2286_s11 = inlined_call_operand.vmem [shape: f32[2,6,1], index: 11, kind: output, shape index: {}]  }
   0x1   :  { %2287 = sst [smem:[#allocation8_spill]] %s2283_s8 }
   0x2   :  { %2288 = sst [smem:[#allocation9_spill]] %s2284_s9 }
   0x3   :  { %2289 = sst [smem:[#allocation10_spill]] %s2285_s10 }
   0x4   :  { %2290 = sst [smem:[#allocation11_spill]] %s2286_s11 }
   0x5   :  { %16 = vsyncpa [#allocation3], 0 }
   0x6   :  { %18 = vsyncpa [#allocation3 + $0x1], 0 }
   0x7   :  { %19 = vsyncpa [#allocation5], 0  ;;  %s1779_s17 = smov 0   ;;  %s1781_s18 = smov 0  }
   0x8   :  { %s1783_s19 = smov 0   ;;  %s1785_s20 = smov 0  }
   0x9 LB: > { %s1798_s21 = sadd.s32 4294967295, %s1695_s20   ;;  %p45_p0 = scmp.ne.s32.totalorder %s1687_s18, %s1683_s17  ;;  %s1695_s20 = sphi %s1785_s20, %s2301_s20   ;;  %s1691_s19 = sphi %s1783_s19, %s2300_s19   ;;  %s1687_s18 = sphi %s1781_s18, %s2299_s18   ;;  %s1683_s17 = sphi %s1779_s17, %s2298_s17  }
   0xa   : > { %p46_p1 = scmp.eq.s32.totalorder %s1798_s21, 0  ;;  %p1334_p2 = scmp.ge.s32.totalorder %s1695_s20, 1 }
   0xb   : > { %p297_p3 = scmp.lt.s32.totalorder %s1695_s20, 3  ;;  %s2292_s8 = sld [smem:[#allocation8_spill]] }
   0xc   : > { %p1806_p4 = por %p46_p1, %p45_p0  ;;  %s1697_s27 = smov [#allocation4]  }
   0xd   : > { %p1813_p5 = pnand %p1334_p2, %p297_p3  ;;  %s328_s28 = sshll.u32 %s1697_s27, 4  ;;  %s329_s28 = int_to_ptr.vmem [resolvable:$true] %s328_s28 }
   0xe   : > { %s1822_s29 = sadd.s32 1, %s1695_s20   ;;  %s1698_s30 = smov 128  }
   0xf   : > { %p1379_p6 = pneg %p1813_p5  ;;  %s1699_s12 = smov 8  }
  0x10   : > { %s29_s13 = ssub.s32 %s1695_s20, %s1822_s29  ;;  %s32_s14 = sadd.s32 1, %s1691_s19 }
  0x11   : > { %s326_s25 = sshll.u32 %s2292_s8, 4  ;;  %p1380_p7 = pnand %p1379_p6, %p46_p1  ;;  %s327_s25 = int_to_ptr.hbm [resolvable:$true] %s326_s25 }
  0x12   : > { %p30_p8 = scmp.eq.s32.totalorder %s29_s13, 0  ;;  %p39_p9 = scmp.ne.s32.totalorder %s1691_s19, %s1687_s18 }
  0x13   : > { %1382 = dma.hbm_to_vmem [thread:$0]  (!%p1380_p7), %s327_s25, 1536, %s329_s28, [#allocation5], %s1698_s30, %s1698_s30, %s1699_s12  }
  0x14   : > { %p40_p10 = scmp.eq.s32.totalorder %s1695_s20, 0  ;;  %p1388_p11 = scmp.lt.s32.totalorder %s1695_s20, 2 }
  0x15   : > { %s1835_s15 = scalar_select %p30_p8, %s1691_s19, %s32_s14  }
  0x16   : > { %p41_p12 = por %p40_p10, %p39_p9  ;;  %s348_s16 = sand.u32 1, %s1691_s19  }
  0x17   : > { %s1337_s17 = sshll.u32 %s348_s16, 6  ;;  %s1368_s23 = sshll.u32 %s1695_s20, 6 }
  0x18   : > { %s357_s8 = scalar_lea.hbm %s2275_s0, %s1368_s23  ;;  %s352_s11 = scalar_lea.vmem [#allocation2], %s1337_s17 }
  0x19   : > { %s360_s10 = sshll.u32 %s352_s11, 4  ;;  %s358_s9 = sshll.u32 %s357_s8, 4  ;;  %s361_s10 = int_to_ptr.vmem [resolvable:$true] %s360_s10  ;;  %s359_s9 = int_to_ptr.hbm [resolvable:$true] %s358_s9 }
  0x1a   : > { %p1842_p13 = pnand %p1388_p11, %p41_p12  ;;  %s349_s28 = scalar_lea.sflag [#allocation3], %s348_s16 }
  0x1b   : > { %s1627_s13 = sshra.s32 %s359_s9, 4  ;;  %s1634_s8 = scalar_lea.hbm %s2275_s0, 128  ;;  %s1628_s13 = int_to_ptr.hbm [resolvable:$true] %s1627_s13 }
  0x1c   : > { %s1629_s14 = scalar_lea.hbm %s1628_s13, 64  ;;  %p1631_p2 = pneg %p1842_p13 }
  0x1d   : > { %p1630_p0 = scmp.ne.s32.totalorder %s1628_s13, %s1629_s14  ;;  %p1635_p7 = scmp.lt.s32.totalorder %s1628_s13, %s2275_s0 }
  0x1e   : > { %p1636_p8 = scmp.lt.s32.totalorder %s1634_s8, %s1629_s14 }
  0x1f   : > { %p1632_p3 = pnand %p1631_p2, %p1630_p0 }
  0x20   : > { %p1637_p9 = por %p1636_p8, %p1635_p7 }
  0x21   : > { %p1633_p6 = pneg %p1632_p3 }
  0x23   : > { %p1638_p10 = pnand %p1637_p9, %p1633_p6 }
  0x25   : > { %1641 = shalt.err (!%p1638_p10)
}
  0x26   : > { %1386 = dma.hbm_to_vmem [thread:$0]  (!%p1842_p13), %s359_s9, 1024, %s361_s10, %s349_s28, %s1698_s30, %s1698_s30, %s1699_s12  }
  0x27   : > { %378 = sbr.rel (%p1813_p5) target bundleno = 1327 (0x52f), region = 64  ;;  %s380_s16 = sand.u32 (!%p1813_p5), 1, %s1687_s18  }
  0x28   : > { %s1341_s24 = sshll.u32 (!%p1813_p5), %s380_s16, 6  ;;  %s381_s27 = scalar_lea.sflag (!%p1813_p5), [#allocation3], %s380_s16 }
  0x29   : > { %s1862_s20 = scalar_lea.vmem (!%p1813_p5), [#allocation2], %s1341_s24 }
  0x2c   : > { %1674 = dma.done.wait (%p1806_p4), %s381_s27, 1024  }
  0x2d   : > { %1676 = vsyncadd (%p1806_p4), %s381_s27, 4294966272 }
  0x2e   : > { %1678 = dma.done.wait (%p46_p1), [#allocation5], 1536  }
  0x2f   : > { %1680 = vsyncadd (%p46_p1), [#allocation5], 4294965760  ;;  %v448_v0 = vld [vmem:[%s2277_s2 + $0x8] sm:$0xff]  ;;  %v447_v1 = vld [vmem:[%s2277_s2] sm:$0xff]  ;;  %vm449_vm0 = vcmask 130048   ;;  %vm580_vm1 = vcmask 1042432  }
  0x30   : > { %470 = vmatpush.msra.mxu0 %v448_v0  ;;  %528 = vmatpush.msra.mxu2 %v448_v0  ;;  %v439_v2 = vld [vmem:[%s1862_s20] sm:$0xff]  ;;  %v445_v4 = vld [vmem:[%s1862_s20 + $0x30] sm:$0xff]  ;;  %v442_v5 = vld [vmem:[%s1862_s20 + $0x18] sm:$0xff]  ;;  %vm584_vm2 = vcmask 1045504   ;;  %vm578_vm3 = vcmask 1040384   ;;  %s1700_s22 = smov 40  }
  0x31   : > { %557 = vmatpush.msra.mxu3 %v448_v0  ;;  %v443_v3 = vld [vmem:[%s1862_s20 + $0x20] sm:$0xff]  ;;  %1370 = vmatpush.msra.mxu1 %v448_v0  ;;  %v440_v6 = vld [vmem:[%s1862_s20 + $0x8] sm:$0xff]  ;;  %v446_v8 = vld [vmem:[%s1862_s20 + $0x38] sm:$0xff]  ;;  %s1701_s12 = smov 32   ;;  %vm589_vm4 = vcmask 1041408   ;;  %s1702_s25 = smov 48  }
  0x32   : > { %471 = vmatpush.msra.mxu0 %v447_v1  ;;  %529 = vmatpush.msra.mxu2 %v447_v1  ;;  %v444_v7 = vld [vmem:[%s1862_s20 + $0x28] sm:$0xff]  ;;  %v441_v9 = vld [vmem:[%s1862_s20 + $0x10] sm:$0xff]  ;;  %s1703_s28 = smov 8   ;;  %vm582_vm5 = vcmask 1043456   ;;  %s1704_s13 = smov 24   ;;  %vm586_vm6 = vcmask 1046528  }
  0x33   : > { %558 = vmatpush.msra.mxu3 %v447_v1  ;;  %1344 = vmatmul.msk.f32.vlgmr.msra.gmra.mxu0 %vm449_vm0, %v439_v2  ;;  %s1705_s14 = smov 120   ;;  %s1706_s17 = smov 16   ;;  %vm725_vm7 = vcmask 64512   ;;  %vm730_vm8 = vcmask 195584   ;;  %vm733_vm9 = vcmask 261120   ;;  %vm736_vm10 = vcmask 326656  }
  0x34   : > { %1348 = vmatmul.msk.f32.vlgmr.msra.gmra.mxu2 %vm449_vm0, %v443_v3  ;;  %1350 = vmatmul.msk.f32.vlgmr.msra.gmra.mxu3 %vm449_vm0, %v445_v4  ;;  %s1707_s8 = smov 112   ;;  %s1708_s11 = smov 56   ;;  %vm739_vm11 = vcmask 392192   ;;  %vm742_vm12 = vcmask 457728   ;;  %vm877_vm13 = vcmask 293888   ;;  %vm1005_vm14 = vcmask 31744  }
  0x35   : > { %499 = vmatpush.msrb.mxu0 %v448_v0  ;;  %1371 = vmatpush.msra.mxu1 %v447_v1  ;;  %s1710_s10 = smov 88   ;;  %s1711_s26 = smov 96   ;;  %vm1012_vm15 = vcmask 97280  }
  0x36   : > { %1347 = vmatmul.msk.f32.vlgmr.msra.gmra.mxu1 %vm449_vm0, %v442_v5  ;;  %s1712_s30 = smov 80   ;;  %p431_p1 = scmp.lt.s32.totalorder %s1798_s21, 1 }
  0x37   : > { %500 = vmatpush.msrb.mxu0 %v447_v1 }
  0x38   : > { %s2303_s21 = smov (!%p431_p1, %s1798_s21), 1 }
  0x39   : > { %s433_s20 = scalar_lea.vmem %s2276_s1, %s2303_s21 }
  0x3b   : > { %1345 = vmatmul.msk.f32.gmra.mxu0 %vm449_vm0, %v440_v6 }
  0x3c   : > { %1349 = vmatmul.msk.f32.gmra.mxu2 %vm449_vm0, %v444_v7  ;;  %1351 = vmatmul.msk.f32.gmra.mxu3 %vm449_vm0, %v446_v8 }
  0x43   : > { %1346 = vmatmul.msk.f32.vlgmr.msrb.gmra.mxu0 %vm449_vm0, %v441_v9 }
  0xb0   : > { %v1894_v10 = vpop.f32.mrf.mxu0 }
  0xb1   : > { %v600_v34 = vrot.slane %v1894_v10, 3  ;;  %v567_v48 = vrot.slane %v1894_v10, 7  ;;  %v591_v49 = vrot.slane %v1894_v10, 1  ;;  %v609_v4 = vrot.slane %v1894_v10, 5 }
  0xb3   : > { %v1902_v14 = vpop.f32.mrf.mxu1  ;;  %v579_v60 = vsel %vm578_vm3, 0.0, %v567_v48 }
  0xb4   : > { %v642_v16 = vrot.slane %v1902_v14, 6  ;;  %v660_v28 = vrot.slane %v1902_v14, 2  ;;  %v581_v3 = vsel %vm580_vm1, %v579_v60, 0.0 }
  0xb7   : > { %v1896_v11 = vpop.f32.mrf.mxu2  ;;  %v1898_v12 = vpop.f32.mrf.mxu3 }
  0xb8   : > { %v1900_v13 = vpop.f32.mrf.mxu0  ;;  %v602_v41 = vrot.slane %v1896_v11, 5  ;;  %v613_v42 = vrot.slane %v1896_v11, 7  ;;  %v615_v43 = vrot.slane %v1898_v12, 4  ;;  %v573_v51 = vrot.slane %v1896_v11, 1 }
  0xb9   : > { %v640_v15 = vrot.slane %v1900_v13, 1  ;;  %v649_v17 = vrot.slane %v1900_v13, 3  ;;  %v658_v27 = vrot.slane %v1900_v13, 5  ;;  %v576_v52 = vrot.slane %v1898_v12, 6 }
  0xba   : > { %v1960_v50 = vsel %vm578_vm3, %v613_v42, %v615_v43  ;;  %v595_v59 = vrot.slane %v1896_v11, 3  ;;  %v604_v61 = vrot.slane %v1898_v12, 2  ;;  %v588_v63 = vsel %vm578_vm3, %v573_v51, 0.0 }
  0xbb   : > { %v646_v23 = vsel %vm580_vm1, %v640_v15, %v642_v16  ;;  %v655_v24 = vsel %vm580_vm1, %v649_v17, %v1902_v14  ;;  %v666_v40 = vsel %vm580_vm1, %v658_v27, %v660_v28  ;;  %v1989_v5 = vsel %vm589_vm4, %v588_v63, %v576_v52 }
  0xbc   : > { %v1993_v7 = vsel %vm578_vm3, %v602_v41, %v604_v61  ;;  %v621_v16 = vrot.slane %v1900_v13, 7  ;;  %v625_v17 = vrot.slane %v1902_v14, 4 }
  0xbe   : > { %v622_v13 = vsel %vm578_vm3, %v567_v48, %v621_v16 }
  0xbf   : > { %v1907_v18 = vpop.f32.mrf.mxu2  ;;  %v563_v19 = vpop.f32.mrf.mxu3 }
  0xc0   : > { %v644_v20 = vrot.slane %v1907_v18, 3  ;;  %v651_v21 = vrot.slane %v1907_v18, 5  ;;  %v662_v22 = vrot.slane %v1907_v18, 7  ;;  %v653_v25 = vrot.slane %v563_v19, 2  ;;  %v1920_v30 = vpop.f32.mrf.mxu0 }
  0xc1   : > { %v664_v26 = vrot.slane %v563_v19, 4  ;;  %v606_v39 = vsel %vm580_vm1, %v600_v34, %v1920_v30  ;;  %v634_v46 = vrot.slane %v563_v19, 6  ;;  %v593_v47 = vrot.slane %v1920_v30, 6 }
  0xc2   : > { %v1918_v29 = vsel %vm584_vm2, %v655_v24, %v651_v21  ;;  %v1926_v32 = vsel %vm578_vm3, %v644_v20, %v563_v19  ;;  %v1929_v33 = vsel %vm584_vm2, %v646_v23, %v644_v20  ;;  %v1937_v37 = vsel %vm578_vm3, %v651_v21, %v653_v25 }
  0xc3   : > { %v1923_v31 = vsel %vm578_vm3, %v662_v22, %v664_v26  ;;  %v1449_v36 = vpack.i.bf16 %v1918_v29, %v1926_v32  ;;  %v1444_v38 = vpack.i.bf16 %v1929_v33, %v1937_v37  ;;  %v1951_v44 = vsel %vm584_vm2, %v666_v40, %v662_v22 }
  0xc4   : > { %v1454_v35 = vpack.i.bf16 %v1918_v29, %v1923_v31  ;;  %v1954_v45 = vsel %vm584_vm2, %v606_v39, %v602_v41  ;;  %v1464_v53 = vpack.i.bf16 %v1923_v31, %v1951_v44  ;;  %v629_v55 = vrot.slane %v1907_v18, 1 }
  0xc5   : > { %1450 = vrot.lane.b32.xlu1 %v1449_v36, %s1701_s12  ;;  %1445 = vrot.lane.b32.xlu0 %v1444_v38, %s1701_s12  ;;  %v1469_v54 = vpack.i.bf16 %v1954_v45, %v1960_v50  ;;  %v1459_v56 = vpack.i.bf16 %v1951_v44, %v1937_v37  ;;  %v635_v57 = vsel %vm589_vm4, %v576_v52, %v634_v46  ;;  %v570_v62 = vrot.slane %v1920_v30, 4 }
  0xc6   : > { %1455 = vrot.lane.b32.xlu2 %v1454_v35, %s1700_s22  ;;  %v597_v58 = vsel %vm580_vm1, %v591_v49, %v593_v47  ;;  %v639_v0 = vsel %vm578_vm3, %v629_v55, %v635_v57  ;;  %v611_v2 = vrot.slane %v1920_v30, 2  ;;  %v1479_v11 = vpack.i.bf16 %v1954_v45, %v1993_v7 }
  0xc7   : > { %v1983_v1 = vsel %vm584_vm2, %v597_v58, %v595_v59  ;;  %v1474_v6 = vpack.i.bf16 %v1929_v33, %v639_v0  ;;  %v583_v9 = vsel %vm582_vm5, %v581_v3, %v570_v62  ;;  %v2012_v20 = vsel %vm578_vm3, %v595_v59, %v1898_v12 }
  0xc8   : > { %v1484_v8 = vpack.i.bf16 %v1983_v1, %v1989_v5  ;;  %v617_v10 = vsel %vm580_vm1, %v609_v4, %v611_v2  ;;  %v585_v15 = vsel %vm584_vm2, %v583_v9, 0.0  ;;  %v626_v21 = vsel %vm582_vm5, %v570_v62, %v625_v17 }
  0xc9   : > { %v618_v18 = vsel %vm584_vm2, %v617_v10, %v613_v42  ;;  %v2008_v19 = vsel %vm586_vm6, %v585_v15, %v573_v51  ;;  %v1499_v23 = vpack.i.bf16 %v1983_v1, %v2012_v20  ;;  %v637_v24 = vsel %vm580_vm1, %v622_v13, %v626_v21 }
  0xca   : > { %v1489_v22 = vpack.i.bf16 %v618_v18, %v1993_v7  ;;  %v1504_v14 = vpack.i.bf16 %v2008_v19, %v1989_v5  ;;  %v630_v12 = vsel %vm586_vm6, %v573_v51, %v629_v55  ;;  %v1494_v26 = vpack.i.bf16 %v618_v18, %v639_v0 }
  0xcb   : > { %v638_v25 = vsel %vm584_vm2, %v637_v24, %v630_v12  ;;  %v1509_v28 = vpack.i.bf16 %v2008_v19, %v2012_v20  ;;  %v1524_v34 = vpack.i.bf16 %v618_v18, %v1960_v50  ;;  %v1544_v36 = vpack.i.bf16 %v1951_v44, %v1923_v31 }
  0xcc   : > { %v1519_v27 = vpack.i.bf16 %v638_v25, %v1926_v32  ;;  %v1539_v30 = vpack.i.bf16 %v638_v25, %v639_v0  ;;  %v1514_v35 = vpack.i.bf16 %v638_v25, %v1960_v50  ;;  %v1534_v38 = vpack.i.bf16 %v1918_v29, %v1937_v37  ;;  %v871_v50 = vld [vmem:[%s2279_s4] sm:$0xff] }
  0xcd   : > { %1470 = vrot.lane.b32.xlu1 %v1469_v54, %s1703_s28  ;;  %1460 = vrot.lane.b32.xlu0 %v1459_v56, %s1700_s22  ;;  %v1529_v39 = vpack.i.bf16 %v1929_v33, %v1926_v32  ;;  %v1709_v54 = vmov 0   ;;  %vm1102_vm1 = vcmask 588800   ;;  %vm1240_vm2 = vcmask 21504  }
  0xce   : > { %1465 = vrot.lane.b32.xlu2 %v1464_v53, %s1702_s25  ;;  %1549 = vset.pattern.permute.xlu0 %v1709_v54  ;;  %vm1219_vm3 = vcmask 1041409   ;;  %vm1225_vm6 = vcmask 1044484  }
  0xcf   : > { %1595 = vset.pattern.permute.xlu2 %v1709_v54 }
  0xd5   : > { %1485 = vrot.lane.b32.xlu1 %v1484_v8, %s1705_s14  ;;  %1480 = vrot.lane.b32.xlu0 %v1479_v11, %s1706_s17 }
  0xd6   : > { %1475 = vrot.lane.b32.xlu2 %v1474_v6, %s1704_s13 }
  0xdd   : > { %1500 = vrot.lane.b32.xlu1 %v1499_v23, %s1703_s28  ;;  %1505 = vrot.lane.b32.xlu0 %v1504_v14, %s1707_s8 }
  0xde   : > { %1490 = vrot.lane.b32.xlu2 %v1489_v22, %s1703_s28 }
  0xe5   : > { %1520 = vrot.lane.b32.xlu1 %v1519_v27, %s1704_s13  ;;  %1510 = vrot.lane.b32.xlu0 %v1509_v28, %s1705_s14 }
  0xe6   : > { %1495 = vrot.lane.b32.xlu2 %v1494_v26, %s1706_s17 }
  0xed   : > { %1525 = vrot.lane.b32.xlu1 %v1524_v34, %s1704_s13  ;;  %1515 = vrot.lane.b32.xlu0 %v1514_v35, %s1706_s17  ;;  %s1716_s13 = smov 4   ;;  %s2297_s17 = sld [smem:[#allocation11_spill]] }
  0xee   : > { %1540 = vrot.lane.b32.xlu2 %v1539_v30, %s1701_s12  ;;  %s1714_s12 = smov 72  }
  0xf5   : > { %1535 = vrot.lane.b32.xlu1 %v1534_v38, %s1702_s25  ;;  %1530 = vrot.lane.b32.xlu0 %v1529_v39, %s1700_s22  ;;  %s1713_s22 = smov 104   ;;  %s1715_s25 = smov 124  }
  0xf6   : > { %1545 = vrot.lane.b32.xlu2 %v1544_v36, %s1708_s11 }
  0xfd   : > { %874 = vperm.xlu0 %1549, %v871_v50  }
 0x120   : > { %v2045_v40 = vpop.permute.xlu2 %1455 }
 0x121   : > { %v1458_v49 = vunpack.i.h.bf16 %v2045_v40  ;;  %v1457_v51 = vunpack.i.l.bf16 %v2045_v40 }
 0x128   : > { %v2047_v41 = vpop.permute.xlu2 %1465 }
 0x129   : > { %v1468_v52 = vunpack.i.h.bf16 %v2047_v41  ;;  %v1467_v53 = vunpack.i.l.bf16 %v2047_v41 }
 0x130   : > { %v2053_v31 = vpop.permute.xlu2 %1475 }
 0x131   : > { %v1478_v55 = vunpack.i.h.bf16 %v2053_v31  ;;  %v1477_v56 = vunpack.i.l.bf16 %v2053_v31 }
 0x137   : > { %v2049_v42 = vpop.permute.xlu1 %1450  ;;  %v2051_v43 = vpop.permute.xlu0 %1445 }
 0x138   : > { %v2057_v33 = vpop.permute.xlu2 %1490  ;;  %v1453_v57 = vunpack.i.h.bf16 %v2049_v42  ;;  %v1452_v58 = vunpack.i.l.bf16 %v2049_v42  ;;  %v1448_v59 = vunpack.i.h.bf16 %v2051_v43  ;;  %v1447_v60 = vunpack.i.l.bf16 %v2051_v43 }
 0x139   : > { %v1492_v61 = vunpack.i.l.bf16 %v2057_v33  ;;  %v1493_v28 = vunpack.i.h.bf16 %v2057_v33 }
 0x13f   : > { %v1471_v29 = vpop.permute.xlu1 %1470  ;;  %v2055_v37 = vpop.permute.xlu0 %1460 }
 0x140   : > { %v1496_v48 = vpop.permute.xlu2 %1495  ;;  %v1473_v11 = vunpack.i.h.bf16 %v1471_v29  ;;  %v1472_v10 = vunpack.i.l.bf16 %v1471_v29  ;;  %v1462_v36 = vunpack.i.l.bf16 %v2055_v37 }
 0x141   : > { %v1498_v0 = vunpack.i.h.bf16 %v1496_v48  ;;  %v1497_v4 = vunpack.i.l.bf16 %v1496_v48 }
 0x147   : > { %v1486_v32 = vpop.permute.xlu1 %1485  ;;  %v2059_v44 = vpop.permute.xlu0 %1480 }
 0x148   : > { %v1487_v62 = vunpack.i.l.bf16 %v1486_v32  ;;  %v1488_v15 = vunpack.i.h.bf16 %v1486_v32  ;;  %v2082_v21 = vpop.permute.xlu2 %1540  ;;  %v1483_v38 = vunpack.i.h.bf16 %v2059_v44 }
 0x14a   : > { %v790_v16 = vsel %vm725_vm7, %v1487_v62, %v2012_v20  ;;  %v1482_v62 = vunpack.i.l.bf16 %v2059_v44 }
 0x14b   : > { %v792_v39 = vsel %vm449_vm0, %v790_v16, %v1492_v61 }
 0x14f   : > { %v2061_v46 = vpop.permute.xlu1 %1500  ;;  %v1506_v47 = vpop.permute.xlu0 %1505 }
 0x150   : > { %v1508_v2 = vunpack.i.h.bf16 %v1506_v47  ;;  %v1507_v6 = vunpack.i.l.bf16 %v1506_v47  ;;  %v1503_v24 = vunpack.i.h.bf16 %v2061_v46  ;;  %v1502_v25 = vunpack.i.l.bf16 %v2061_v46  ;;  %v1546_v31 = vpop.permute.xlu2 %1545 }
 0x151   : > { %v1548_v16 = vunpack.i.h.bf16 %v1546_v31 }
 0x152   : > { %v845_v22 = vsel %vm725_vm7, %v1508_v2, %v1488_v15  ;;  %v726_v32 = vsel %vm725_vm7, %v2008_v19, %v1503_v24  ;;  %v727_v47 = vsel %vm725_vm7, %v1989_v5, %v1502_v25 }
 0x153   : > { %v847_v30 = vsel %vm449_vm0, %v845_v22, %v1954_v45  ;;  %v728_v2 = vsel %vm449_vm0, %v726_v32, %v1483_v38 }
 0x154   : > { %v849_v48 = vsel %vm730_vm8, %v847_v30, %v1493_v28 }
 0x157   : > { %v1521_v63 = vpop.permute.xlu1 %1520  ;;  %v1511_v3 = vpop.permute.xlu0 %1510 }
 0x158   : > { %v1513_v8 = vunpack.i.h.bf16 %v1511_v3  ;;  %v1512_v9 = vunpack.i.l.bf16 %v1511_v3  ;;  %v1523_v23 = vunpack.i.h.bf16 %v1521_v63  ;;  %v1522_v12 = vunpack.i.l.bf16 %v1521_v63 }
 0x159   : > { %v1543_v63 = vunpack.i.h.bf16 %v2082_v21 }
 0x15a   : > { %v789_v17 = vsel %vm725_vm7, %v1513_v8, %v1983_v1  ;;  %v846_v18 = vsel %vm725_vm7, %v1507_v6, %v1512_v9 }
 0x15b   : > { %v791_v13 = vsel %vm449_vm0, %v789_v17, %v1473_v11  ;;  %v848_v14 = vsel %vm449_vm0, %v846_v18, %v1993_v7 }
 0x15c   : > { %v793_v20 = vsel %vm730_vm8, %v791_v13, %v1498_v0  ;;  %v850_v1 = vsel %vm730_vm8, %v848_v14, %v1472_v10 }
 0x15d   : > { %v795_v26 = vsel %vm733_vm9, %v793_v20, %v1523_v23  ;;  %v852_v27 = vsel %vm733_vm9, %v850_v1, %v1497_v4  ;;  %v1547_v23 = vunpack.i.l.bf16 %v1546_v31 }
 0x15e   : > { %v854_v34 = vsel %vm736_vm10, %v852_v27, %v1522_v12  ;;  %v797_v35 = vsel %vm736_vm10, %v795_v26, %v1448_v59  ;;  %v867_v26 = vld [vmem:[%s2278_s3] sm:$0xf] }
 0x15f   : > { %v1526_v7 = vpop.permute.xlu1 %1525  ;;  %v1516_v43 = vpop.permute.xlu0 %1515  ;;  %v856_v29 = vsel %vm739_vm11, %v854_v34, %v1447_v60  ;;  %v799_v54 = vsel %vm739_vm11, %v797_v35, %v1458_v49  ;;  %v1463_v49 = vunpack.i.h.bf16 %v2055_v37  ;;  %v898_v27 = vld [vmem:[%s2280_s5] sm:$0xff] }
 0x160   : > { %v1518_v33 = vunpack.i.h.bf16 %v1516_v43  ;;  %v1517_v46 = vunpack.i.l.bf16 %v1516_v43  ;;  %v858_v45 = vsel %vm742_vm12, %v856_v29, %v1457_v51  ;;  %v1528_v59 = vunpack.i.h.bf16 %v1526_v7  ;;  %945 = vmatpush.msrb.mxu1 %v898_v27  ;;  %1372 = vmatpush.msrb.mxu3 %v898_v27 }
 0x161   : > { %v870_v50 = vpack.c.bf16 %v858_v45, %v858_v45  ;;  %v1527_v61 = vunpack.i.l.bf16 %v1526_v7  ;;  %v801_v44 = vsel %vm742_vm12, %v799_v54, %v1467_v53 }
 0x162   : > { %v794_v60 = vsel %vm730_vm8, %v792_v39, %v1517_v46  ;;  %v851_v19 = vsel %vm733_vm9, %v849_v48, %v1518_v33  ;;  %v731_v3 = vsel %vm730_vm8, %v728_v2, %v1528_v59  ;;  %v861_v10 = vrot.slane %v801_v44, 4 }
 0x163   : > { %v796_v51 = vsel %vm733_vm9, %v794_v60, %v1477_v56  ;;  %v853_v5 = vsel %vm736_vm10, %v851_v19, %v1478_v55  ;;  %v882_v40 = vsel %vm589_vm4, %v870_v50, 0  ;;  %v1542_v56 = vunpack.i.l.bf16 %v2082_v21 }
 0x164   : > { %v798_v0 = vsel %vm736_vm10, %v796_v51, %v1452_v58  ;;  %889 = vmatpush.bf16.msra.mxu0 %v882_v40  ;;  %v729_v55 = vsel %vm449_vm0, %v727_v47, %v1482_v62  ;;  %v855_v53 = vsel %vm739_vm11, %v853_v5, %v1453_v57  ;;  %v734_v22 = vsel %vm733_vm9, %v731_v3, %v1543_v63 }
 0x165   : > { %v800_v37 = vsel %vm739_vm11, %v798_v0, %v1462_v36  ;;  %v732_v4 = vsel %vm730_vm8, %v729_v55, %v1527_v61  ;;  %v857_v41 = vsel %vm742_vm12, %v855_v53, %v1463_v49  ;;  %v1717_v63 = vmov 0.0   ;;  %v1086_v0 = vld [vmem:[%s2282_s7 + $0x8] sm:$0xff] }
 0x166   : > { %v802_v58 = vsel %vm742_vm12, %v800_v37, %v1468_v52  ;;  %v735_v21 = vsel %vm733_vm9, %v732_v4, %v1542_v56  ;;  %v1085_v37 = vld [vmem:[%s2282_s7] sm:$0xff]  ;;  %vm1221_vm4 = vcmask 1042434   ;;  %vm1230_vm8 = vcmask 128000  }
 0x167   : > { %v1536_v6 = vpop.permute.xlu1 %1535  ;;  %v1531_v11 = vpop.permute.xlu0 %1530  ;;  %v862_v15 = vrot.slane %v802_v58, 4  ;;  %vm1247_vm9 = vcmask 5120  }
 0x168   : > { %v1538_v8 = vunpack.i.h.bf16 %v1536_v6  ;;  %v1537_v9 = vunpack.i.l.bf16 %v1536_v6  ;;  %v1533_v17 = vunpack.i.h.bf16 %v1531_v11  ;;  %v1532_v18 = vunpack.i.l.bf16 %v1531_v11 }
 0x169   : > { %v863_v52 = vsel %vm582_vm5, %v861_v10, %v862_v15 }
 0x16a   : > { %v737_v42 = vsel %vm736_vm10, %v734_v22, %v1533_v17  ;;  %v738_v57 = vsel %vm736_vm10, %v735_v21, %v1532_v18  ;;  %v869_v13 = vpack.c.bf16 %v857_v41, %v863_v52 }
 0x16b   : > { %v741_v14 = vsel %vm739_vm11, %v738_v57, %v1537_v9  ;;  %v740_v24 = vsel %vm739_vm11, %v737_v42, %v1538_v8 }
 0x16c   : > { %890 = vmatpush.bf16.msra.mxu0 %v869_v13  ;;  %v743_v12 = vsel %vm742_vm12, %v740_v24, %v1548_v16  ;;  %v744_v20 = vsel %vm742_vm12, %v741_v14, %v1547_v23 }
 0x16d   : > { %v866_v1 = vsel %vm582_vm5, %v744_v20, %v861_v10 }
 0x16e   : > { %v868_v25 = vpack.c.bf16 %v866_v1, %v743_v12 }
 0x16f   : > { %v875_v28 = vpop.permute.xlu0 %874 }
 0x170   : > { %891 = vmatpush.bf16.msra.mxu0 %v868_v25 }
 0x173   : > { %1352 = vmatmul.msk.bf16.vlgmr.msra.gmra.mxu0 %vm877_vm13, %v867_v26 }
 0x1f0   : > { %v893_v30 = vpop.f32.mrf.mxu0 }
 0x1f1   : > { %v894_v7 = vadd.f32 %v893_v30, %v875_v28 }
 0x1f3   : > { %v897_v34 = vmax.f32 %v894_v7, 0.0 }
 0x1f5   : > { %902 = vrot.lane.b32.xlu0 %v897_v34, %s1707_s8  ;;  %908 = vrot.lane.b32.xlu2 %v897_v34, %s1710_s10 }
 0x1f6   : > { %906 = vrot.lane.b32.xlu1 %v897_v34, %s1711_s26  ;;  %1353 = vmatmul.msk.f32.vlgmr.msrb.gmra.mxu1 %vm725_vm7, %v897_v34  ;;  %s2295_s26 = sld [smem:[#allocation9_spill]] }
 0x1f8   : > { %v895_v35 = vpop.f32.mrf.mxu0 }
 0x1fd   : > { %910 = vrot.lane.b32.xlu2 %v897_v34, %s1712_s30  ;;  %s1343_s30 = sshll.u32 %s2303_s21, 3 }
 0x1fe   : > { %900 = vrot.lane.b32.xlu1 %v897_v34, %s1705_s14  ;;  %s437_s8 = scalar_lea.vmem %s2297_s17, %s1343_s30 }
 0x205   : > { %904 = vrot.lane.b32.xlu2 %v897_v34, %s1713_s22 }
 0x206   : > { %912 = vrot.lane.b32.xlu1 %v897_v34, %s1714_s12 }
 0x24f   : > { %v909_v38 = vpop.permute.xlu2 %908 }
 0x257   : > { %v911_v29 = vpop.permute.xlu2 %910 }
 0x25f   : > { %v905_v33 = vpop.permute.xlu2 %904 }
 0x267   : > { %v903_v32 = vpop.permute.xlu0 %902 }
 0x268   : > { %v907_v36 = vpop.permute.xlu1 %906 }
 0x269   : > { %1357 = vmatmul.msk.f32.vlgmr.msrb.gmra.mxu3 %vm725_vm7, %v907_v36 }
 0x270   : > { %v901_v39 = vpop.permute.xlu1 %900 }
 0x271   : > { %1354 = vmatmul.msk.f32.gmra.mxu1 %vm725_vm7, %v901_v39  ;;  %1358 = vmatmul.msk.f32.gmra.mxu3 %vm725_vm7, %v909_v38 }
 0x273   : > { %v2165_v43 = vpop.f32.mrf.mxu1 }
 0x274   : > { %1050 = vrot.lane.b32.xlu0 %v2165_v43, %s1705_s14 }
 0x278   : > { %v913_v46 = vpop.permute.xlu1 %912 }
 0x279   : > { %1355 = vmatmul.msk.f32.gmra.mxu1 %vm725_vm7, %v903_v32  ;;  %1359 = vmatmul.msk.f32.gmra.mxu3 %vm725_vm7, %v911_v29 }
 0x281   : > { %1356 = vmatmul.msk.f32.gmra.mxu1 %vm725_vm7, %v905_v33  ;;  %1360 = vmatmul.msk.f32.gmra.mxu3 %vm725_vm7, %v913_v46 }
 0x2e6   : > { %v1051_v44 = vpop.permute.xlu0 %1050 }
 0x2ec   : > { %v959_v45 = vpop.f32.mrf.mxu3 }
 0x2ee   : > { %v2173_v47 = vpop.f32.mrf.mxu1 }
 0x2ef   : > { %v1550_v48 = vpack.i.bf16 0.0, %v2173_v47 }
 0x2f1   : > { %1551 = vrot.lane.b32.xlu0 %v1550_v48, %s1705_s14  ;;  %s1718_s14 = smov 12  }
 0x2f4   : > { %v962_v50 = vpop.f32.mrf.mxu3 }
 0x2f6   : > { %v953_v54 = vpop.f32.mrf.mxu1 }
 0x2f7   : > { %v1555_v59 = vpack.i.bf16 %v2165_v43, %v953_v54 }
 0x2f9   : > { %1556 = vrot.lane.b32.xlu1 %v1555_v59, %s1715_s25 }
 0x2fc   : > { %v965_v61 = vpop.f32.mrf.mxu3 }
 0x2fd   : > { %v1570_v60 = vpack.i.bf16 %v959_v45, %v965_v61 }
 0x2fe   : > { %v956_v19 = vpop.f32.mrf.mxu1 }
 0x2ff   : > { %1571 = vrot.lane.b32.xlu2 %v1570_v60, %s1716_s13  ;;  %v1580_v62 = vpack.i.bf16 %v956_v19, %v962_v50  ;;  %v1560_v51 = vpack.i.bf16 %v2173_v47, %v956_v19 }
 0x301   : > { %1581 = vrot.lane.b32.xlu0 %v1580_v62, %s1703_s28  ;;  %1561 = vrot.lane.b32.xlu1 %v1560_v51, %s1715_s25 }
 0x304   : > { %v968_v5 = vpop.f32.mrf.mxu3 }
 0x305   : > { %v1575_v40 = vpack.i.bf16 %v962_v50, %v968_v5  ;;  %v1585_v49 = vpack.i.bf16 %v968_v5, %v965_v61 }
 0x307   : > { %1576 = vrot.lane.b32.xlu2 %v1575_v40, %s1716_s13 }
 0x309   : > { %1586 = vrot.lane.b32.xlu0 %v1585_v49, %s1703_s28  ;;  %1566 = vrot.lane.b32.xlu1 %v1560_v51, %s1716_s13 }
 0x30f   : > { %1018 = vrot.lane.b32.xlu2 %v1717_v63, %s1715_s25  ;;  %s2296_s25 = sld [smem:[#allocation10_spill]] }
 0x311   : > { %987 = vrot.lane.b32.xlu0 %v959_v45, %s1703_s28  ;;  %1591 = vrot.lane.b32.xlu1 %v1575_v40, %s1718_s14 }
 0x317   : > { %976 = vrot.lane.b32.xlu2 %v953_v54, %s1716_s13 }
 0x319   : > { %1094 = vperm.xlu0 %1549, %v1086_v0   ;;  %998 = vrot.lane.b32.xlu1 %v965_v61, %s1718_s14 }
 0x31f   : > { %1089 = vperm.xlu2 %1595, %v1085_v37  }
 0x359   : > { %v1572_v56 = vpop.permute.xlu2 %1571 }
 0x35a   : > { %v1573_v23 = vunpack.i.l.bf16 %v1572_v56  ;;  %v1574_v1 = vunpack.i.h.bf16 %v1572_v56 }
 0x361   : > { %v1577_v2 = vpop.permute.xlu2 %1576 }
 0x362   : > { %v1578_v11 = vunpack.i.l.bf16 %v1577_v2  ;;  %v1579_v41 = vunpack.i.h.bf16 %v1577_v2 }
 0x363   : > { %v1552_v31 = vpop.permute.xlu0 %1551 }
 0x364   : > { %v1554_v58 = vunpack.i.h.bf16 %v1552_v31  ;;  %v1553_v53 = vunpack.i.l.bf16 %v1552_v31 }
 0x369   : > { %v1019_v27 = vpop.permute.xlu2 %1018 }
 0x36a   : > { %v1039_v39 = vsel %vm1005_vm14, %v1019_v27, %v2173_v47 }
 0x36b   : > { %v1557_v55 = vpop.permute.xlu1 %1556 }
 0x36c   : > { %v1558_v3 = vunpack.i.l.bf16 %v1557_v55  ;;  %v1559_v16 = vunpack.i.h.bf16 %v1557_v55  ;;  %v1369_v55 = vld [vmem:[%s2281_s6] sm:$0xff] }
 0x36e   : > { %v1070_v17 = vsel %vm1005_vm14, %v1051_v44, %v1558_v3  ;;  %v1040_v57 = vsel %vm1005_vm14, %v1559_v16, %v953_v54  ;;  %v1133_v3 = vld [vmem:[#allocation4 + $0x40] sm:$0xff] }
 0x36f   : > { %v1073_v42 = vsel %vm725_vm7, %v1070_v17, %v959_v45  ;;  %v1043_v34 = vsel %vm725_vm7, %v1040_v57, %v1574_v1  ;;  %v1132_v1 = vld [vmem:[#allocation4 + $0x38] sm:$0xff] }
 0x370   : > { %v1076_v28 = vsel %vm1012_vm15, %v1073_v42, %v1573_v23 }
 0x371   : > { %v977_v60 = vpop.permute.xlu2 %976 }
 0x372   : > { %v1007_v40 = vsel %vm1005_vm14, %v2165_v43, %v977_v60 }
 0x373   : > { %v2188_v4 = vpop.permute.xlu0 %1581  ;;  %v1562_v6 = vpop.permute.xlu1 %1561 }
 0x374   : > { %v1564_v8 = vunpack.i.h.bf16 %v1562_v6  ;;  %v1563_v9 = vunpack.i.l.bf16 %v1562_v6  ;;  %v1583_v33 = vunpack.i.l.bf16 %v2188_v4  ;;  %v1584_v5 = vunpack.i.h.bf16 %v2188_v4  ;;  %v1127_v4 = vld [vmem:[#allocation4 + $0x10] sm:$0xff]  ;;  %v1125_v6 = vld [vmem:[#allocation4] sm:$0xff] }
 0x376   : > { %v1069_v10 = vsel %vm1005_vm14, %v1554_v58, %v1564_v8  ;;  %v1071_v15 = vsel %vm1005_vm14, %v1553_v53, %v1563_v9  ;;  %v1041_v13 = vsel %vm1005_vm14, %v1564_v8, %v956_v19 }
 0x377   : > { %v1074_v18 = vsel %vm725_vm7, %v1071_v15, %v962_v50  ;;  %v1072_v22 = vsel %vm725_vm7, %v1069_v10, %v956_v19  ;;  %v1044_v35 = vsel %vm725_vm7, %v1041_v13, %v1579_v41 }
 0x378   : > { %v1077_v21 = vsel %vm1012_vm15, %v1074_v18, %v1578_v11  ;;  %v1075_v20 = vsel %vm1012_vm15, %v1072_v22, %v1579_v41  ;;  %v1131_v18 = vld [vmem:[#allocation4 + $0x30] sm:$0xff]  ;;  %v1129_v22 = vld [vmem:[#allocation4 + $0x20] sm:$0xff]  ;;  %v1126_v41 = vld [vmem:[#allocation4 + $0x8] sm:$0xff] }
 0x379   : > { %v1084_v52 = vpack.c.bf16 %v1077_v21, %v1077_v21  ;;  %v1083_v7 = vpack.c.bf16 %v1076_v28, %v1075_v20  ;;  %v1090_v2 = vpop.permute.xlu2 %1089  ;;  %v1134_v20 = vld [vmem:[#allocation4 + $0x48] sm:$0xff] }
 0x37b   : > { %v1587_v14 = vpop.permute.xlu0 %1586  ;;  %v1567_v24 = vpop.permute.xlu1 %1566  ;;  %v1107_v12 = vsel %vm582_vm5, %v1084_v52, 0  ;;  %vm1223_vm5 = vcmask 1043459  }
 0x37c   : > { %v1589_v25 = vunpack.i.h.bf16 %v1587_v14  ;;  %v1588_v26 = vunpack.i.l.bf16 %v1587_v14  ;;  %1112 = vmatpush.bf16.msrb.mxu2 %v1107_v12  ;;  %v1568_v30 = vunpack.i.l.bf16 %v1567_v24  ;;  %v1569_v48 = vunpack.i.h.bf16 %v1567_v24  ;;  %v1128_v12 = vld [vmem:[#allocation4 + $0x18] sm:$0xff] }
 0x37e   : > { %v1046_v36 = vsel %vm1012_vm15, %v1043_v34, %v1588_v26  ;;  %v1047_v38 = vsel %vm1012_vm15, %v1044_v35, %v1589_v25  ;;  %v1008_v29 = vsel %vm1005_vm14, %v2173_v47, %v1568_v30  ;;  %v1042_v45 = vsel %vm725_vm7, %v1039_v39, %v1568_v30  ;;  %v1130_v34 = vld [vmem:[#allocation4 + $0x28] sm:$0xff]  ;;  %v1135_v35 = vld [vmem:[#allocation4 + $0x50] sm:$0xff] }
 0x37f   : > { %v1082_v32 = vpack.c.bf16 %v1047_v38, %v1046_v36  ;;  %v1011_v54 = vsel %vm725_vm7, %v1008_v29, %v1583_v33  ;;  %v1045_v61 = vsel %vm1012_vm15, %v1042_v45, %v1583_v33  ;;  %v1006_v62 = vsel %vm1005_vm14, 0.0, %v1569_v48 }
 0x380   : > { %1113 = vmatpush.bf16.msrb.mxu2 %v1083_v7  ;;  %v1009_v0 = vsel %vm725_vm7, %v1006_v62, %v1584_v5 }
 0x383   : > { %v1592_v46 = vpop.permute.xlu1 %1591  ;;  %v988_v47 = vpop.permute.xlu0 %987 }
 0x384   : > { %v1593_v50 = vunpack.i.l.bf16 %v1592_v46  ;;  %1114 = vmatpush.bf16.msrb.mxu2 %v1082_v32  ;;  %v1594_v51 = vunpack.i.h.bf16 %v1592_v46  ;;  %v1010_v49 = vsel %vm725_vm7, %v1007_v40, %v988_v47  ;;  %v1136_v32 = vld [vmem:[#allocation4 + $0x58] sm:$0xff]  ;;  %v1197_v47 = vlaneseq }
 0x385   : > { %vm1227_vm7 = vcmask 1045509  }
 0x386   : > { %v1015_v59 = vsel %vm1012_vm15, %v1011_v54, %v1593_v50  ;;  %v1013_v56 = vsel %vm1012_vm15, %v1009_v0, %v1594_v51  ;;  %v1234_v50 = vld [vmem:[%s2295_s26] sm:$0x3f]  ;;  %v1198_v5 = vand.u32 127, %v1197_v47 }
 0x387   : > { %v1081_v19 = vpack.c.bf16 %v1045_v61, %v1015_v59  ;;  %v1596_v54 = vld [vmem:[%s433_s20] ss:$0 sm:$0xff] }
 0x388   : > { %v1239_v59 = vmul.f32 %v1596_v54, %v1234_v50 }
 0x389   : > { %1115 = vmatpush.bf16.msrb.mxu2 %v1081_v19 }
 0x38a   : > { %v1241_v61 = vsel %vm1240_vm2, %v1239_v59, 0.0 }
 0x38b   : > { %v999_v63 = vpop.permute.xlu1 %998  ;;  %v1095_v16 = vpop.permute.xlu0 %1094 }
 0x38c   : > { %v1014_v44 = vsel %vm1012_vm15, %v1010_v49, %v999_v63  ;;  %v1200_v49 = vadd.s32 4294967288, %v1198_v5 }
 0x38d   : > { %v1080_v31 = vpack.c.bf16 %v1014_v44, %v1013_v56 }
 0x38f   : > { %1116 = vmatpush.bf16.msrb.mxu2 %v1080_v31 }
 0x392   : > { %1365 = vmatmul.msk.bf16.vlgmr.msrb.gmra.mxu2 %vm1102_vm1, %v1369_v55 }
 0x415   : > { %v1118_v37 = vpop.f32.mrf.mxu2 }
 0x416   : > { %v1119_v43 = vadd.f32 %v1118_v37, %v1090_v2 }
 0x418   : > { %v1123_v58 = vmax.f32 %v1119_v43, 0.0 }
 0x41a   : > { %v1145_v53 = vmul.f32 %v1133_v3, %v1123_v58  ;;  %v1139_v8 = vmul.f32 %v1127_v4, %v1123_v58  ;;  %v1137_v9 = vmul.f32 %v1125_v6, %v1123_v58  ;;  %v1143_v23 = vmul.f32 %v1131_v18, %v1123_v58 }
 0x41b   : > { %v1141_v42 = vmul.f32 %v1129_v22, %v1123_v58  ;;  %v1147_v38 = vmul.f32 %v1135_v35, %v1123_v58 }
 0x41c   : > { %v1173_v11 = vsel %vm449_vm0, %v1145_v53, 0.0  ;;  %v1155_v10 = vsel %vm449_vm0, %v1139_v8, 0.0  ;;  %v1149_v15 = vsel %vm449_vm0, %v1137_v9, 0.0  ;;  %v1167_v14 = vsel %vm449_vm0, %v1143_v23, 0.0 }
 0x41d   : > { %v1120_v17 = vpop.f32.mrf.mxu2  ;;  %1174 = vadd.xlane.f32.xlu2 %v1173_v11  ;;  %1156 = vadd.xlane.f32.xlu0 %v1155_v10  ;;  %v1161_v24 = vsel %vm449_vm0, %v1141_v42, 0.0  ;;  %v1179_v29 = vsel %vm449_vm0, %v1147_v38, 0.0 }
 0x41e   : > { %v1121_v21 = vadd.f32 %v1120_v17, %v1095_v16  ;;  %1150 = vadd.xlane.f32.xlu1 %v1149_v15 }
 0x420   : > { %v1124_v52 = vmax.f32 %v1121_v21, 0.0 }
 0x422   : > { %v1138_v57 = vmul.f32 %v1126_v41, %v1124_v52  ;;  %v1140_v25 = vmul.f32 %v1128_v12, %v1124_v52  ;;  %v1146_v26 = vmul.f32 %v1134_v20, %v1124_v52  ;;  %v1144_v27 = vmul.f32 %v1132_v1, %v1124_v52 }
 0x423   : > { %v1142_v36 = vmul.f32 %v1130_v34, %v1124_v52  ;;  %v1148_v33 = vmul.f32 %v1136_v32, %v1124_v52 }
 0x424   : > { %v1152_v13 = vsel %vm449_vm0, %v1138_v57, 0.0  ;;  %v1158_v28 = vsel %vm449_vm0, %v1140_v25, 0.0  ;;  %v1176_v30 = vsel %vm449_vm0, %v1146_v26, 0.0  ;;  %v1170_v7 = vsel %vm449_vm0, %v1144_v27, 0.0 }
 0x425   : > { %1153 = vadd.xlane.f32.xlu2 %v1152_v13  ;;  %1168 = vadd.xlane.f32.xlu0 %v1167_v14  ;;  %v1164_v39 = vsel %vm449_vm0, %v1142_v36, 0.0  ;;  %v1182_v46 = vsel %vm449_vm0, %v1148_v33, 0.0  ;;  %vm1202_vm0 = vcmask 130112  }
 0x426   : > { %1162 = vadd.xlane.f32.xlu1 %v1161_v24  ;;  %v1245_v24 = vld [vmem:[%s2296_s25] sm:$0x3f] }
 0x42d   : > { %1159 = vadd.xlane.f32.xlu2 %v1158_v28  ;;  %1177 = vadd.xlane.f32.xlu0 %v1176_v30 }
 0x42e   : > { %1171 = vadd.xlane.f32.xlu1 %v1170_v7 }
 0x435   : > { %1165 = vadd.xlane.f32.xlu2 %v1164_v39 }
 0x436   : > { %1180 = vadd.xlane.f32.xlu1 %v1179_v29 }
 0x43d   : > { %1183 = vadd.xlane.f32.xlu2 %v1182_v46 }
 0x43e   : > { %1242 = vadd.xlane.f32.xlu1 %v1241_v61 }
 0x490   : > { %v1175_v45 = vpop.xlane.xlu2 %1174  ;;  %v1157_v60 = vpop.xlane.xlu0 %1156 }
 0x491   : > { %v1151_v48 = vpop.xlane.xlu1 %1150  ;;  %v1204_v44 = vperm.slane %v1157_v60, %v1198_v5  ;;  %v1213_v16 = vperm.slane %v1175_v45, %v1198_v5 }
 0x492   : > { %v1199_v55 = vperm.slane %v1151_v48, %v1198_v5 }
 0x498   : > { %v1154_v19 = vpop.xlane.xlu2 %1153  ;;  %v1169_v40 = vpop.xlane.xlu0 %1168 }
 0x499   : > { %v1163_v62 = vpop.xlane.xlu1 %1162  ;;  %v1201_v56 = vperm.slane %v1154_v19, %v1200_v49  ;;  %v1210_v8 = vperm.slane %v1169_v40, %v1198_v5 }
 0x49a   : > { %v1207_v2 = vperm.slane %v1163_v62, %v1198_v5 }
 0x49b   : > { %v1203_v3 = vsel %vm1202_vm0, %v1201_v56, %v1199_v55 }
 0x4a0   : > { %v1160_v51 = vpop.xlane.xlu2 %1159  ;;  %v1178_v4 = vpop.xlane.xlu0 %1177 }
 0x4a1   : > { %v1172_v63 = vpop.xlane.xlu1 %1171  ;;  %v1205_v0 = vperm.slane %v1160_v51, %v1200_v49  ;;  %v1214_v11 = vperm.slane %v1178_v4, %v1200_v49 }
 0x4a2   : > { %v1211_v6 = vperm.slane %v1172_v63, %v1200_v49 }
 0x4a3   : > { %v1206_v37 = vsel %vm1202_vm0, %v1205_v0, %v1204_v44  ;;  %v1215_v41 = vsel %vm1202_vm0, %v1214_v11, %v1213_v16 }
 0x4a4   : > { %v1220_v53 = vsel %vm1219_vm3, %v1206_v37, %v1203_v3  ;;  %v1212_v15 = vsel %vm1202_vm0, %v1211_v6, %v1210_v8 }
 0x4a8   : > { %v1166_v31 = vpop.xlane.xlu2 %1165 }
 0x4a9   : > { %v1208_v43 = vperm.slane %v1166_v31, %v1200_v49  ;;  %v1181_v10 = vpop.xlane.xlu1 %1180 }
 0x4aa   : > { %v1216_v21 = vperm.slane %v1181_v10, %v1198_v5 }
 0x4ab   : > { %v1209_v58 = vsel %vm1202_vm0, %v1208_v43, %v1207_v2 }
 0x4ac   : > { %v1222_v9 = vsel %vm1221_vm4, %v1209_v58, %v1220_v53 }
 0x4ad   : > { %v1224_v18 = vsel %vm1223_vm5, %v1212_v15, %v1222_v9 }
 0x4ae   : > { %v1226_v23 = vsel %vm1225_vm6, %v1215_v41, %v1224_v18 }
 0x4b0   : > { %v1184_v17 = vpop.xlane.xlu2 %1183 }
 0x4b1   : > { %v1217_v22 = vperm.slane %v1184_v17, %v1200_v49  ;;  %v1243_v13 = vpop.xlane.xlu1 %1242 }
 0x4b3   : > { %v1218_v52 = vsel %vm1202_vm0, %v1217_v22, %v1216_v21 }
 0x4b4   : > { %v1228_v42 = vsel %vm1227_vm7, %v1218_v52, %v1226_v23 }
 0x4b5   : > { %v1231_v57 = vsel %vm1230_vm8, %v1228_v42, 0.0 }
 0x4b6   : > { %1232 = vadd.xlane.f32.xlu0 %v1231_v57 }
 0x529   : > { %v1233_v14 = vpop.xlane.xlu0 %1232 }
 0x52a   : > { %v1244_v12 = vadd.f32 %v1243_v13, %v1233_v14 }
 0x52c   : > { %v1246_v20 = vadd.f32 %v1245_v24, %v1244_v12 }
 0x52e   : > { %1248 = vst.msk [vmem:[%s437_s8] sm:$0x3f] %vm1247_vm9, %v1246_v20 }
 0x52f PF: > { %p22_p4 = scmp.ge.s32.totalorder %s1822_s29, 4   ;;  %s2298_s17 = smov %s1687_s18 }
 0x530   : > { %s2299_s18 = smov %s1691_s19  ;;  %s2300_s19 = smov %s1835_s15 }
 0x531   : > { %s2301_s20 = smov %s1822_s29  ;;  %24 = sbr.rel (!%p22_p4) target bundleno = 9 (0x9), region = 111 }
 0x536   :  { %1268 = vsyncpa [#allocation3], 1 }
 0x537   :  { %1270 = vsyncpa [#allocation3 + $0x1], 1 }
 0x538   :  { %1271 = vsyncpa [#allocation5], 1 }

</bundles_post_ra>
